<compile_context>
chip_gen: v5e
topology: v5e:2x2
jax: 0.10.0
libtpu: 0.0.40
codegen_flags: <defaults>
</compile_context>

<pallas_src>
import math
from functools import partial

import jax
import jax.numpy as jnp
from jax.experimental import pallas as pl
from jax.experimental.pallas import tpu as pltpu


# bf16 MXU operands, f32 accumulation.
_MXU_DTYPE = jnp.bfloat16


# ----------------------------------------------------------------------------
# One fused kernel: all transformer blocks (grid axis) + output head
# ----------------------------------------------------------------------------
def _fused_kernel(x0_ref, y_ref, qn_ref, w_ref, b_ref, hw_ref, hb_ref,
                  pred_ref, bal_ref, x_scr, mask_scr,
                  *, B, L, D, H, n_shared, n_selected, F1, F2, num_blocks):
    hr = H - n_shared
    dk = D // H
    M = B * L
    scale = 1.0 / math.sqrt(dk)
    blk = pl.program_id(0)

    # ---- one-time init: residual stream, balance-loss accumulator, causal bias
    @pl.when(blk == 0)
    def _init():
        x_scr[...] = x0_ref[...]
        bal_ref[...] = jnp.zeros_like(bal_ref)
        ri = jax.lax.broadcasted_iota(jnp.int32, (L, L), 0)
        ci = jax.lax.broadcasted_iota(jnp.int32, (L, L), 1)
        mask_scr[...] = jnp.where(ci <= ri, 0.0, -1e30).astype(jnp.float32)

    x = x_scr[...]                                   # (M, D) f32 residual stream
    W = w_ref[...]                                   # (D, 5D+hr) bf16 weight slab
    bias = b_ref[...]                                # (9, D) f32 bias/LN slab
    kq_b, v_b, out_b = bias[0:1], bias[1:2], bias[2:3]
    ln1_g, ln1_b = bias[3:4], bias[4:5]
    ffn_b1, ffn_b2 = bias[5:6], bias[6:7]
    ln2_g, ln2_b = bias[7:8], bias[8:9]

    def mm(a, w_cols):
        # bf16 MXU operands (weights already bf16), f32 accumulation.
        return jnp.dot(a.astype(_MXU_DTYPE), w_cols,
                       preferred_element_type=jnp.float32)

    # ---- fused [Q/K | router-logits] projection (kq_same=True, query==key) ----
    proj = mm(x, W[:, :D + hr])                      # (M, D+hr)
    qk = proj[:, :D] + kq_b                          # shared Q == K projection
    logits = proj[:, D:D + hr]                       # router logits (no bias)
    v = mm(y_ref[...], W[:, D + hr:2 * D + hr]) + v_b

    # ---- MoH routing: exact softmax over routed heads, iterative top-k -------
    # TODO(synk): exact MoHAttention routing source not provided; RouterKT
    # convention (shared heads gate=1, routed heads gated by un-renormalized
    # top-k softmax probabilities).
    lm = logits - jnp.max(logits, axis=-1, keepdims=True)
    le = jnp.exp(lm)
    probs = le / jnp.sum(le, axis=-1, keepdims=True)         # exact (router path)
    col = jax.lax.broadcasted_iota(jnp.int32, (M, hr), 1)
    remaining = probs
    sel = jnp.zeros_like(probs)
    for _ in range(min(n_selected, hr)):
        mx = jnp.max(remaining, axis=-1, keepdims=True)
        hit = remaining >= mx
        first_idx = jnp.min(jnp.where(hit, col, hr), axis=-1, keepdims=True)
        first = col == first_idx                      # lowest-index max (tie rule)
        sel = sel + first.astype(jnp.float32)
        remaining = jnp.where(first, -jnp.inf, remaining)
    routed_gates = probs * sel                        # (M, hr)
    if n_shared > 0:
        gates = jnp.concatenate(
            [jnp.ones((M, n_shared), jnp.float32), routed_gates], axis=-1)
    else:
        gates = routed_gates                          # (M, H)

    # ---- attention: all (batch, head) pairs batched into two dot_generals ----
    q3 = jnp.stack([qk[b * L:(b + 1) * L, h * dk:(h + 1) * dk]
                    for b in range(B) for h in range(H)], axis=0).astype(_MXU_DTYPE)
    v3 = jnp.stack([v[b * L:(b + 1) * L, h * dk:(h + 1) * dk]
                    for b in range(B) for h in range(H)], axis=0).astype(_MXU_DTYPE)
    s = jnp.einsum('gqd,gkd->gqk', q3, q3,
                   preferred_element_type=jnp.float32) * scale     # (B*H, L, L)
    s = s + mask_scr[...]                                          # causal bias
    s = s - jnp.max(s, axis=-1, keepdims=True)
    p = jnp.exp(s)
    p = p * pl.reciprocal(jnp.sum(p, axis=-1, keepdims=True), approx=True)
    o3 = jnp.einsum('gqk,gkd->gqd', p.astype(_MXU_DTYPE), v3,
                    preferred_element_type=jnp.float32)            # (B*H, L, dk)
    # gate each head and concatenate in registers (no VMEM scratch round-trip)
    attn = jnp.concatenate(
        [jnp.concatenate(
            [o3[b * H + h] * gates[b * L:(b + 1) * L, h:h + 1] for h in range(H)],
            axis=-1)
         for b in range(B)], axis=0)                               # (M, D)

    attn_out = mm(attn, W[:, 2 * D + hr:3 * D + hr]) + out_b

    def ln(z, g, bb):
        mu = jnp.mean(z, axis=-1, keepdims=True)
        var = jnp.mean((z - mu) ** 2, axis=-1, keepdims=True)
        return (z - mu) * jax.lax.rsqrt(var + 1e-5) * g + bb

    # residual + LN1 + FFN + residual + LN2 (dropout = identity, eval mode)
    x1 = ln(x + attn_out, ln1_g, ln1_b)
    h1 = jnp.maximum(mm(x1, W[:, 3 * D + hr:4 * D + hr]) + ffn_b1, 0.0)
    h2 = mm(h1, W[:, 4 * D + hr:5 * D + hr]) + ffn_b2
    x2 = ln(x1 + h2, ln2_g, ln2_b)
    x_scr[...] = x2                                   # carried to next block

    # ---- Switch-style balance loss, accumulated in the resident output -------
    f = jnp.mean(sel, axis=0, keepdims=True)          # (1, hr)
    pm = jnp.mean(probs, axis=0, keepdims=True)       # (1, hr)
    bal_ref[...] = bal_ref[...] + float(hr) * jnp.sum(f * pm, axis=-1, keepdims=True)

    # ---- output head fused into the last grid step ---------------------------
    @pl.when(blk == num_blocks - 1)
    def _head():
        hw = hw_ref[...]                              # (RH, F1+F2) bf16
        hb = hb_ref[...]                              # (2, F1+F2+1) f32
        # split-weight matmul replaces the [x | qnext] concat
        h1h = (mm(x2, hw[:D, :F1]) + mm(qn_ref[...], hw[D:2 * D, :F1])
               + hb[0:1, :F1])
        h1h = jnp.maximum(h1h, 0.0)
        h2h = jnp.maximum(mm(h1h, hw[:F1, F1:F1 + F2]) + hb[0:1, F1:F1 + F2], 0.0)
        w3_row = hb[1:2, F1:F1 + F2]                  # w3^T, stored pre-transposed
        logit = (jnp.sum(h2h * w3_row, axis=-1, keepdims=True)
                 + hb[0:1, F1 + F2:F1 + F2 + 1])      # VPU reduce, no N=1 matmul
        pred_ref[...] = jax.nn.sigmoid(logit)


def fused_forward(params, x0, y, qn, *, B, L, cfg):
    D = cfg.embedding_size
    H = cfg.n_heads
    hs = cfg.n_shared_heads
    hr = H - hs
    assert hr > 0, "need at least one routed head"
    F1, F2 = cfg.final_fc_dim, cfg.final_fc_dim2
    NB = cfg.num_blocks
    M = B * L
    WW = 5 * D + hr
    RH = params["head_w"].shape[0]
    HW = F1 + F2

    kernel = partial(_fused_kernel, B=B, L=L, D=D, H=H, n_shared=hs,
                     n_selected=cfg.n_selected_heads, F1=F1, F2=F2,
                     num_blocks=NB)

    pred, bal = pl.pallas_call(
        kernel,
        out_shape=(jax.ShapeDtypeStruct((M, 1), jnp.float32),
                   jax.ShapeDtypeStruct((1, 1), jnp.float32)),
        grid=(NB,),
        in_specs=[
            pl.BlockSpec((M, D), lambda b: (0, 0)),            # x0 (query/key)
            pl.BlockSpec((M, D), lambda b: (0, 0)),            # y (values)
            pl.BlockSpec((M, D), lambda b: (0, 0)),            # qnext embedding
            pl.BlockSpec((None, D, WW), lambda b: (b, 0, 0)),  # per-block weights
            pl.BlockSpec((None, 9, D), lambda b: (b, 0, 0)),   # per-block bias/LN
            pl.BlockSpec((RH, HW), lambda b: (0, 0)),          # head weights
            pl.BlockSpec((2, HW + 1), lambda b: (0, 0)),       # head biases + w3^T
        ],
        out_specs=(pl.BlockSpec((M, 1), lambda b: (0, 0)),
                   pl.BlockSpec((1, 1), lambda b: (0, 0))),
        scratch_shapes=[pltpu.VMEM((M, D), jnp.float32),       # residual stream
                        pltpu.VMEM((L, L), jnp.float32)],      # causal bias
        compiler_params=pltpu.CompilerParams(
            dimension_semantics=("arbitrary",),
            vmem_limit_bytes=32 * 1024 * 1024),
    )(x0, y, qn, params["block_w"], params["block_b"],
      params["head_w"], params["head_b"])
    return pred, bal[0, 0]


# ----------------------------------------------------------------------------
# Model config, params (packed slabs), embeddings + glue in plain JAX
# ----------------------------------------------------------------------------
class Cfg:
    num_skills = 32
    num_questions = 16
    seq_len = 8
    embedding_size = 32
    num_blocks = 1
    n_heads = 4
    n_shared_heads = 2
    n_selected_heads = 2
    final_fc_dim = 64
    final_fc_dim2 = 32


def cosine_positional_embedding(max_len, d_model):
    position = jnp.arange(max_len, dtype=jnp.float32)[:, None]
    div_term = jnp.exp(
        jnp.arange(0, d_model, 2, dtype=jnp.float32) * (-math.log(10000.0) / d_model))
    pe = jnp.zeros((max_len, d_model), dtype=jnp.float32)
    pe = pe.at[:, 0::2].set(jnp.sin(position * div_term))
    pe = pe.at[:, 1::2].set(jnp.cos(position * div_term))
    return pe


def init_params(key, cfg):
    D = cfg.embedding_size
    H, hs = cfg.n_heads, cfg.n_shared_heads
    hr = H - hs
    F1, F2 = cfg.final_fc_dim, cfg.final_fc_dim2

    keys = iter(jax.random.split(key, 64))

    def w(shape, scale=0.05):
        return (scale * jax.random.normal(next(keys), shape)).astype(jnp.float32)

    params = {
        "q_embed": w((cfg.num_skills, D), 0.1),
        "qa_embed": w((2, D), 0.1),
        "q_embed_diff": w((cfg.num_skills + 1, D), 0.1),
        "qa_embed_diff": w((2 * cfg.num_skills + 1, D), 0.1),
        # reset(): params with size(0) == num_questions+1 are zero-initialized
        "difficult_param": jnp.zeros((cfg.num_questions + 1, 1), jnp.float32),
        "pos_emb": cosine_positional_embedding(cfg.seq_len, D),
    }

    # Per-block weight slab (bf16): columns = [kq_w | wg_w | v_w | out_w | ffn_w1 | ffn_w2]
    # Per-block bias/LN slab (f32): rows = [kq_b, v_b, out_b, ln1_g, ln1_b,
    #                                       ffn_b1, ffn_b2, ln2_g, ln2_b]
    w_slabs, b_slabs = [], []
    for _ in range(cfg.num_blocks):
        kq_w, wg_w = w((D, D)), w((D, hr))
        v_w, out_w = w((D, D)), w((D, D))
        ffn_w1, ffn_w2 = w((D, D)), w((D, D))
        w_slabs.append(jnp.concatenate([kq_w, wg_w, v_w, out_w, ffn_w1, ffn_w2],
                                       axis=1))
        b_slabs.append(jnp.stack([
            jnp.zeros(D), jnp.zeros(D), jnp.zeros(D),     # kq_b, v_b, out_b
            jnp.ones(D), jnp.zeros(D),                    # ln1_g, ln1_b
            jnp.zeros(D), jnp.zeros(D),                   # ffn_b1, ffn_b2
            jnp.ones(D), jnp.zeros(D),                    # ln2_g, ln2_b
        ], axis=0))
    params["block_w"] = jnp.stack(w_slabs, 0).astype(jnp.bfloat16)   # (NB, D, 5D+hr)
    params["block_b"] = jnp.stack(b_slabs, 0).astype(jnp.float32)    # (NB, 9, D)

    # Output head slabs: hw = [w1 | w2] (bf16), hb row0 = [b1 | b2 | b3],
    # hb row1 holds w3^T (so the kernel never needs a column gather / transpose).
    w1, w2, w3 = w((2 * D, F1)), w((F1, F2)), w((F2, 1))
    RH = max(2 * D, F1, F2)
    hw = jnp.zeros((RH, F1 + F2), jnp.float32)
    hw = hw.at[:2 * D, :F1].set(w1)
    hw = hw.at[:F1, F1:F1 + F2].set(w2)
    params["head_w"] = hw.astype(jnp.bfloat16)
    hb = jnp.zeros((2, F1 + F2 + 1), jnp.float32)
    hb = hb.at[1, F1:F1 + F2].set(w3[:, 0])
    params["head_b"] = hb
    return params


def router_simplekt_forward(params, skills, responses, questions, cfg):
    q = skills[:, :-1]
    qnext = skills[:, 1:]
    r = responses[:, :-1]
    masked_r = r * (r > -1).astype(r.dtype)
    pid = questions[:, :-1]

    # embedding gathers + Rasch difficulty terms stay in XLA (gathers, tiny)
    q_embed_data = params["q_embed"][q]                                   # (B,L,D)
    qa_embed_data = q_embed_data + params["qa_embed"][masked_r]
    q_embed_diff_data = params["q_embed_diff"][q]
    pid_embed_data = params["difficult_param"][pid]                       # (B,L,1)
    q_embed_data = q_embed_data + pid_embed_data * q_embed_diff_data
    qa_embed_diff_data = params["qa_embed_diff"][q + cfg.num_skills * masked_r]
    qa_embed_data = qa_embed_data + pid_embed_data * (
        qa_embed_diff_data + q_embed_diff_data)
    qnext_embed_data = params["q_embed"][qnext]

    B, L, D = q_embed_data.shape
    pos = params["pos_emb"][:L][None]
    x0 = (q_embed_data + pos).reshape(B * L, D)
    y = (qa_embed_data + pos).reshape(B * L, D)
    qn = qnext_embed_data.reshape(B * L, D)

    pred, balance = fused_forward(params, x0, y, qn, B=B, L=L, cfg=cfg)

    return {
        "pred": pred.reshape(B, L),
        "true": responses[:, 1:].astype(jnp.float32),
        "balance_loss": balance,
    }


# ----------------------------------------------------------------------------
if __name__ == "__main__":
    cfg = Cfg()
    key = jax.random.PRNGKey(0)
    pkey, k1, k2, k3 = jax.random.split(key, 4)

    params = init_params(pkey, cfg)

    B = 2
    skills = jax.random.randint(k1, (B, cfg.seq_len), 0, cfg.num_skills, dtype=jnp.int32)
    responses = jax.random.randint(k2, (B, cfg.seq_len), 0, 2, dtype=jnp.int32)
    # mark last step of second sequence as padding (-1) to exercise masking
    responses = responses.at[1, -1].set(-1)
    questions = jax.random.randint(
        k3, (B, cfg.seq_len), 1, cfg.num_questions + 1, dtype=jnp.int32)
    attention_mask = jnp.ones((B, cfg.seq_len), dtype=jnp.int32)  # unused in forward

    fwd = jax.jit(partial(router_simplekt_forward, cfg=cfg))
    out = fwd(params, skills, responses, questions)
    jax.block_until_ready(out)

    assert out["pred"].shape == (B, cfg.seq_len - 1)
    assert bool(jnp.all(jnp.isfinite(out["pred"])))
    assert bool(jnp.all((out["pred"] >= 0.0) & (out["pred"] <= 1.0)))
    assert bool(jnp.isfinite(out["balance_loss"]))
    print("KERNEL_OK")
</pallas_src>

<mosaic_0001>
module attributes {stable_mosaic.version = 11 : i64} {
  func.func @_fused_kernel(%arg0: i32, %arg1: memref<14x32xf32, #tpu.memory_space<vmem>>, %arg2: memref<14x32xf32, #tpu.memory_space<vmem>>, %arg3: memref<14x32xf32, #tpu.memory_space<vmem>>, %arg4: memref<1x32x162xbf16, #tpu.memory_space<vmem>>, %arg5: memref<1x9x32xf32, #tpu.memory_space<vmem>>, %arg6: memref<64x96xbf16, #tpu.memory_space<vmem>>, %arg7: memref<2x97xf32, #tpu.memory_space<vmem>>, %arg8: memref<14x1xf32, #tpu.memory_space<vmem>>, %arg9: memref<1x1xf32, #tpu.memory_space<vmem>>, %arg10: memref<14x32xf32, #tpu.memory_space<vmem>>, %arg11: memref<7x7xf32, #tpu.memory_space<vmem>>) attributes {dimension_semantics = [#tpu.dimension_semantics<arbitrary>], iteration_bounds = array<i64: 1>, scalar_prefetch = 0 : i64, scratch_operands = 2 : i64, tpu.core_type = #tpu.core_type<tc>, window_params = [{pipeline_mode = #tpu.pipeline_mode<synchronous>, transform_indices = @transform_0, window_bounds = array<i64: 14, 32>}, {pipeline_mode = #tpu.pipeline_mode<synchronous>, transform_indices = @transform_1, window_bounds = array<i64: 14, 32>}, {pipeline_mode = #tpu.pipeline_mode<synchronous>, transform_indices = @transform_2, window_bounds = array<i64: 14, 32>}, {transform_indices = @transform_3, window_bounds = array<i64: 1, 32, 162>}, {transform_indices = @transform_4, window_bounds = array<i64: 1, 9, 32>}, {pipeline_mode = #tpu.pipeline_mode<synchronous>, transform_indices = @transform_5, window_bounds = array<i64: 64, 96>}, {pipeline_mode = #tpu.pipeline_mode<synchronous>, transform_indices = @transform_6, window_bounds = array<i64: 2, 97>}, {pipeline_mode = #tpu.pipeline_mode<synchronous>, transform_indices = @transform_7, window_bounds = array<i64: 14, 1>}, {pipeline_mode = #tpu.pipeline_mode<synchronous>, transform_indices = @transform_8, window_bounds = array<i64: 1, 1>}]} {
    %c0_i32 = arith.constant 0 : i32
    %0 = arith.cmpi eq, %arg0, %c0_i32 : i32
    %1 = arith.extui %0 : i1 to i32
    %c0_i32_0 = arith.constant 0 : i32
    %2 = arith.cmpi ne, %1, %c0_i32_0 : i32
    scf.if %2 {
      %c0_56 = arith.constant 0 : index
      %c0_57 = arith.constant 0 : index
      %253 = vector.load %arg1[%c0_56, %c0_57] : memref<14x32xf32, #tpu.memory_space<vmem>>, vector<14x32xf32>
      %c0_58 = arith.constant 0 : index
      %c0_59 = arith.constant 0 : index
      %254 = vector.load %arg10[%c0_58, %c0_59] : memref<14x32xf32, #tpu.memory_space<vmem>>, vector<14x32xf32>
      tpu.vector_store %arg10[%c0_58, %c0_59], %253 {strides = array<i32>} : memref<14x32xf32, #tpu.memory_space<vmem>>, vector<14x32xf32>,
      %cst_60 = arith.constant 0.000000e+00 : f32
      %255 = vector.broadcast %cst_60 : f32 to vector<1x1xf32>
      %c0_61 = arith.constant 0 : index
      %c0_62 = arith.constant 0 : index
      %256 = vector.load %arg9[%c0_61, %c0_62] : memref<1x1xf32, #tpu.memory_space<vmem>>, vector<1x1xf32>
      tpu.vector_store %arg9[%c0_61, %c0_62], %255 {strides = array<i32>} : memref<1x1xf32, #tpu.memory_space<vmem>>, vector<1x1xf32>,
      %257 = tpu.iota {dimensions = array<i32: 0>} : vector<7x7xi32>
      %258 = tpu.iota {dimensions = array<i32: 1>} : vector<7x7xi32>
      %259 = arith.cmpi sle, %258, %257 : vector<7x7xi32>
      %cst_63 = arith.constant 0.000000e+00 : f32
      %cst_64 = arith.constant -1.000000e+30 : f32
      %260 = vector.broadcast %cst_63 : f32 to vector<7x7xf32>
      %261 = vector.broadcast %cst_64 : f32 to vector<7x7xf32>
      %262 = arith.select %259, %260, %261 : vector<7x7xi1>, vector<7x7xf32>
      %c0_65 = arith.constant 0 : index
      %c0_66 = arith.constant 0 : index
      %263 = vector.load %arg11[%c0_65, %c0_66] : memref<7x7xf32, #tpu.memory_space<vmem>>, vector<7x7xf32>
      tpu.vector_store %arg11[%c0_65, %c0_66], %262 {strides = array<i32>} : memref<7x7xf32, #tpu.memory_space<vmem>>, vector<7x7xf32>,
    } else {
    }
    %c0 = arith.constant 0 : index
    %c0_1 = arith.constant 0 : index
    %3 = vector.load %arg10[%c0, %c0_1] : memref<14x32xf32, #tpu.memory_space<vmem>>, vector<14x32xf32>
    %c0_2 = arith.constant 0 : index
    %c0_3 = arith.constant 0 : index
    %c0_4 = arith.constant 0 : index
    %4 = vector.load %arg4[%c0_2, %c0_3, %c0_4] : memref<1x32x162xbf16, #tpu.memory_space<vmem>>, vector<1x32x162xbf16>
    %5 = vector.shape_cast %4 : vector<1x32x162xbf16> to vector<32x162xbf16>
    %c0_5 = arith.constant 0 : index
    %c0_6 = arith.constant 0 : index
    %c0_7 = arith.constant 0 : index
    %6 = vector.load %arg5[%c0_5, %c0_6, %c0_7] : memref<1x9x32xf32, #tpu.memory_space<vmem>>, vector<1x9x32xf32>
    %7 = vector.shape_cast %6 : vector<1x9x32xf32> to vector<9x32xf32>
    %8 = vector.extract_strided_slice %7 {offsets = [0, 0], sizes = [1, 32], strides = [1, 1]} : vector<9x32xf32> to vector<1x32xf32>
    %9 = vector.extract_strided_slice %7 {offsets = [1, 0], sizes = [1, 32], strides = [1, 1]} : vector<9x32xf32> to vector<1x32xf32>
    %10 = vector.extract_strided_slice %7 {offsets = [2, 0], sizes = [1, 32], strides = [1, 1]} : vector<9x32xf32> to vector<1x32xf32>
    %11 = vector.extract_strided_slice %7 {offsets = [3, 0], sizes = [1, 32], strides = [1, 1]} : vector<9x32xf32> to vector<1x32xf32>
    %12 = vector.extract_strided_slice %7 {offsets = [4, 0], sizes = [1, 32], strides = [1, 1]} : vector<9x32xf32> to vector<1x32xf32>
    %13 = vector.extract_strided_slice %7 {offsets = [5, 0], sizes = [1, 32], strides = [1, 1]} : vector<9x32xf32> to vector<1x32xf32>
    %14 = vector.extract_strided_slice %7 {offsets = [6, 0], sizes = [1, 32], strides = [1, 1]} : vector<9x32xf32> to vector<1x32xf32>
    %15 = vector.extract_strided_slice %7 {offsets = [7, 0], sizes = [1, 32], strides = [1, 1]} : vector<9x32xf32> to vector<1x32xf32>
    %16 = vector.extract_strided_slice %7 {offsets = [8, 0], sizes = [1, 32], strides = [1, 1]} : vector<9x32xf32> to vector<1x32xf32>
    %17 = vector.extract_strided_slice %5 {offsets = [0, 0], sizes = [32, 34], strides = [1, 1]} : vector<32x162xbf16> to vector<32x34xbf16>
    %18 = arith.truncf %3 : vector<14x32xf32> to vector<14x32xbf16>
    %cst = arith.constant dense<0.000000e+00> : vector<14x34xf32>
    %19 = tpu.matmul %18, %17, %cst {dimension_numbers = #tpu.dot_dimension_numbers<[1], [0], [0], [1], [0, 0, 1, 1], [], []>} : vector<14x32xbf16>, vector<32x34xbf16>, vector<14x34xf32> -> vector<14x34xf32>
    %20 = vector.extract_strided_slice %19 {offsets = [0, 0], sizes = [14, 32], strides = [1, 1]} : vector<14x34xf32> to vector<14x32xf32>
    %21 = vector.broadcast %8 : vector<1x32xf32> to vector<14x32xf32>
    %22 = arith.addf %20, %21 : vector<14x32xf32>
    %23 = vector.extract_strided_slice %19 {offsets = [0, 32], sizes = [14, 2], strides = [1, 1]} : vector<14x34xf32> to vector<14x2xf32>
    %c0_8 = arith.constant 0 : index
    %c0_9 = arith.constant 0 : index
    %24 = vector.load %arg2[%c0_8, %c0_9] : memref<14x32xf32, #tpu.memory_space<vmem>>, vector<14x32xf32>
    %25 = vector.extract_strided_slice %5 {offsets = [0, 34], sizes = [32, 32], strides = [1, 1]} : vector<32x162xbf16> to vector<32x32xbf16>
    %26 = arith.truncf %24 : vector<14x32xf32> to vector<14x32xbf16>
    %cst_10 = arith.constant dense<0.000000e+00> : vector<14x32xf32>
    %27 = tpu.matmul %26, %25, %cst_10 {dimension_numbers = #tpu.dot_dimension_numbers<[1], [0], [0], [1], [0, 0, 1, 1], [], []>} : vector<14x32xbf16>, vector<32x32xbf16>, vector<14x32xf32> -> vector<14x32xf32>
    %28 = vector.broadcast %9 : vector<1x32xf32> to vector<14x32xf32>
    %29 = arith.addf %27, %28 : vector<14x32xf32>
    %cst_11 = arith.constant dense<0xFF800000> : vector<14xf32>
    %30 = vector.multi_reduction <maximumf>, %23, %cst_11 [1] : vector<14x2xf32> to vector<14xf32>
    %31 = vector.shape_cast %30 : vector<14xf32> to vector<14x1xf32>
    %32 = vector.broadcast %31 : vector<14x1xf32> to vector<14x2xf32>
    %33 = arith.subf %23, %32 : vector<14x2xf32>
    %34 = math.exp %33 : vector<14x2xf32>
    %cst_12 = arith.constant dense<0.000000e+00> : vector<14xf32>
    %35 = vector.multi_reduction <add>, %34, %cst_12 [1] : vector<14x2xf32> to vector<14xf32>
    %36 = vector.shape_cast %35 : vector<14xf32> to vector<14x1xf32>
    %37 = vector.broadcast %36 : vector<14x1xf32> to vector<14x2xf32>
    %38 = arith.divf %34, %37 : vector<14x2xf32>
    %39 = tpu.iota {dimensions = array<i32: 1>} : vector<14x2xi32>
    %cst_13 = arith.constant 0.000000e+00 : f32
    %40 = vector.broadcast %cst_13 : f32 to vector<14x2xf32>
    %cst_14 = arith.constant dense<0xFF800000> : vector<14xf32>
    %41 = vector.multi_reduction <maximumf>, %38, %cst_14 [1] : vector<14x2xf32> to vector<14xf32>
    %42 = vector.shape_cast %41 : vector<14xf32> to vector<14x1xf32>
    %43 = vector.broadcast %42 : vector<14x1xf32> to vector<14x2xf32>
    %44 = arith.cmpf oge, %38, %43 : vector<14x2xf32>
    %c2_i32 = arith.constant 2 : i32
    %45 = vector.broadcast %c2_i32 : i32 to vector<14x2xi32>
    %46 = arith.select %44, %39, %45 : vector<14x2xi1>, vector<14x2xi32>
    %cst_15 = arith.constant dense<2147483647> : vector<14xi32>
    %47 = vector.multi_reduction <minsi>, %46, %cst_15 [1] : vector<14x2xi32> to vector<14xi32>
    %48 = vector.shape_cast %47 : vector<14xi32> to vector<14x1xi32>
    %49 = vector.broadcast %48 : vector<14x1xi32> to vector<14x2xi32>
    %50 = arith.cmpi eq, %39, %49 : vector<14x2xi32>
    %51 = arith.extui %50 : vector<14x2xi1> to vector<14x2xi32>
    %52 = arith.sitofp %51 : vector<14x2xi32> to vector<14x2xf32>
    %53 = arith.addf %40, %52 : vector<14x2xf32>
    %cst_16 = arith.constant 0xFF800000 : f32
    %54 = vector.broadcast %cst_16 : f32 to vector<14x2xf32>
    %55 = arith.select %50, %54, %38 : vector<14x2xi1>, vector<14x2xf32>
    %cst_17 = arith.constant dense<0xFF800000> : vector<14xf32>
    %56 = vector.multi_reduction <maximumf>, %55, %cst_17 [1] : vector<14x2xf32> to vector<14xf32>
    %57 = vector.shape_cast %56 : vector<14xf32> to vector<14x1xf32>
    %58 = vector.broadcast %57 : vector<14x1xf32> to vector<14x2xf32>
    %59 = arith.cmpf oge, %55, %58 : vector<14x2xf32>
    %c2_i32_18 = arith.constant 2 : i32
    %60 = vector.broadcast %c2_i32_18 : i32 to vector<14x2xi32>
    %61 = arith.select %59, %39, %60 : vector<14x2xi1>, vector<14x2xi32>
    %cst_19 = arith.constant dense<2147483647> : vector<14xi32>
    %62 = vector.multi_reduction <minsi>, %61, %cst_19 [1] : vector<14x2xi32> to vector<14xi32>
    %63 = vector.shape_cast %62 : vector<14xi32> to vector<14x1xi32>
    %64 = vector.broadcast %63 : vector<14x1xi32> to vector<14x2xi32>
    %65 = arith.cmpi eq, %39, %64 : vector<14x2xi32>
    %66 = arith.extui %65 : vector<14x2xi1> to vector<14x2xi32>
    %67 = arith.sitofp %66 : vector<14x2xi32> to vector<14x2xf32>
    %68 = arith.addf %53, %67 : vector<14x2xf32>
    %69 = arith.mulf %38, %68 : vector<14x2xf32>
    %cst_20 = arith.constant 1.000000e+00 : f32
    %70 = vector.broadcast %cst_20 : f32 to vector<14x2xf32>
    %71 = tpu.concatenate %70, %69 in 1 : vector<14x2xf32>, vector<14x2xf32> -> vector<14x4xf32>
    %72 = vector.extract_strided_slice %22 {offsets = [0, 0], sizes = [7, 8], strides = [1, 1]} : vector<14x32xf32> to vector<7x8xf32>
    %73 = vector.extract_strided_slice %22 {offsets = [0, 8], sizes = [7, 8], strides = [1, 1]} : vector<14x32xf32> to vector<7x8xf32>
    %74 = vector.extract_strided_slice %22 {offsets = [0, 16], sizes = [7, 8], strides = [1, 1]} : vector<14x32xf32> to vector<7x8xf32>
    %75 = vector.extract_strided_slice %22 {offsets = [0, 24], sizes = [7, 8], strides = [1, 1]} : vector<14x32xf32> to vector<7x8xf32>
    %76 = vector.extract_strided_slice %22 {offsets = [7, 0], sizes = [7, 8], strides = [1, 1]} : vector<14x32xf32> to vector<7x8xf32>
    %77 = vector.extract_strided_slice %22 {offsets = [7, 8], sizes = [7, 8], strides = [1, 1]} : vector<14x32xf32> to vector<7x8xf32>
    %78 = vector.extract_strided_slice %22 {offsets = [7, 16], sizes = [7, 8], strides = [1, 1]} : vector<14x32xf32> to vector<7x8xf32>
    %79 = vector.extract_strided_slice %22 {offsets = [7, 24], sizes = [7, 8], strides = [1, 1]} : vector<14x32xf32> to vector<7x8xf32>
    %80 = vector.shape_cast %72 : vector<7x8xf32> to vector<1x7x8xf32>
    %81 = vector.shape_cast %73 : vector<7x8xf32> to vector<1x7x8xf32>
    %82 = vector.shape_cast %74 : vector<7x8xf32> to vector<1x7x8xf32>
    %83 = vector.shape_cast %75 : vector<7x8xf32> to vector<1x7x8xf32>
    %84 = vector.shape_cast %76 : vector<7x8xf32> to vector<1x7x8xf32>
    %85 = vector.shape_cast %77 : vector<7x8xf32> to vector<1x7x8xf32>
    %86 = vector.shape_cast %78 : vector<7x8xf32> to vector<1x7x8xf32>
    %87 = vector.shape_cast %79 : vector<7x8xf32> to vector<1x7x8xf32>
    %88 = tpu.concatenate %80, %81, %82, %83, %84, %85, %86, %87 in 0 : vector<1x7x8xf32>, vector<1x7x8xf32>, vector<1x7x8xf32>, vector<1x7x8xf32>, vector<1x7x8xf32>, vector<1x7x8xf32>, vector<1x7x8xf32>, vector<1x7x8xf32> -> vector<8x7x8xf32>
    %89 = arith.truncf %88 : vector<8x7x8xf32> to vector<8x7x8xbf16>
    %90 = vector.extract_strided_slice %29 {offsets = [0, 0], sizes = [7, 8], strides = [1, 1]} : vector<14x32xf32> to vector<7x8xf32>
    %91 = vector.extract_strided_slice %29 {offsets = [0, 8], sizes = [7, 8], strides = [1, 1]} : vector<14x32xf32> to vector<7x8xf32>
    %92 = vector.extract_strided_slice %29 {offsets = [0, 16], sizes = [7, 8], strides = [1, 1]} : vector<14x32xf32> to vector<7x8xf32>
    %93 = vector.extract_strided_slice %29 {offsets = [0, 24], sizes = [7, 8], strides = [1, 1]} : vector<14x32xf32> to vector<7x8xf32>
    %94 = vector.extract_strided_slice %29 {offsets = [7, 0], sizes = [7, 8], strides = [1, 1]} : vector<14x32xf32> to vector<7x8xf32>
    %95 = vector.extract_strided_slice %29 {offsets = [7, 8], sizes = [7, 8], strides = [1, 1]} : vector<14x32xf32> to vector<7x8xf32>
    %96 = vector.extract_strided_slice %29 {offsets = [7, 16], sizes = [7, 8], strides = [1, 1]} : vector<14x32xf32> to vector<7x8xf32>
    %97 = vector.extract_strided_slice %29 {offsets = [7, 24], sizes = [7, 8], strides = [1, 1]} : vector<14x32xf32> to vector<7x8xf32>
    %98 = vector.shape_cast %90 : vector<7x8xf32> to vector<1x7x8xf32>
    %99 = vector.shape_cast %91 : vector<7x8xf32> to vector<1x7x8xf32>
    %100 = vector.shape_cast %92 : vector<7x8xf32> to vector<1x7x8xf32>
    %101 = vector.shape_cast %93 : vector<7x8xf32> to vector<1x7x8xf32>
    %102 = vector.shape_cast %94 : vector<7x8xf32> to vector<1x7x8xf32>
    %103 = vector.shape_cast %95 : vector<7x8xf32> to vector<1x7x8xf32>
    %104 = vector.shape_cast %96 : vector<7x8xf32> to vector<1x7x8xf32>
    %105 = vector.shape_cast %97 : vector<7x8xf32> to vector<1x7x8xf32>
    %106 = tpu.concatenate %98, %99, %100, %101, %102, %103, %104, %105 in 0 : vector<1x7x8xf32>, vector<1x7x8xf32>, vector<1x7x8xf32>, vector<1x7x8xf32>, vector<1x7x8xf32>, vector<1x7x8xf32>, vector<1x7x8xf32>, vector<1x7x8xf32> -> vector<8x7x8xf32>
    %107 = arith.truncf %106 : vector<8x7x8xf32> to vector<8x7x8xbf16>
    "tpu.trace_start"() <{level = 10 : i32, message = "gqd,gkd->gqk"}> : () -> ()
    %cst_21 = arith.constant dense<0.000000e+00> : vector<8x7x7xf32>
    %108 = tpu.matmul %89, %89, %cst_21 {dimension_numbers = #tpu.dot_dimension_numbers<[2], [2], [1], [1], [0, 0, 0, 1, 1, 1], [0], [0]>} : vector<8x7x8xbf16>, vector<8x7x8xbf16>, vector<8x7x7xf32> -> vector<8x7x7xf32>
    "tpu.trace_stop"() : () -> ()
    %cst_22 = arith.constant 0.353553385 : f32
    %109 = vector.broadcast %cst_22 : f32 to vector<8x7x7xf32>
    %110 = arith.mulf %108, %109 : vector<8x7x7xf32>
    %c0_23 = arith.constant 0 : index
    %c0_24 = arith.constant 0 : index
    %111 = vector.load %arg11[%c0_23, %c0_24] : memref<7x7xf32, #tpu.memory_space<vmem>>, vector<7x7xf32>
    %112 = vector.shape_cast %111 : vector<7x7xf32> to vector<1x7x7xf32>
    %113 = vector.broadcast %112 : vector<1x7x7xf32> to vector<8x7x7xf32>
    %114 = arith.addf %110, %113 : vector<8x7x7xf32>
    %cst_25 = arith.constant dense<0xFF800000> : vector<8x7xf32>
    %115 = vector.multi_reduction <maximumf>, %114, %cst_25 [2] : vector<8x7x7xf32> to vector<8x7xf32>
    %116 = vector.shape_cast %115 : vector<8x7xf32> to vector<8x7x1xf32>
    %117 = vector.broadcast %116 : vector<8x7x1xf32> to vector<8x7x7xf32>
    %118 = arith.subf %114, %117 : vector<8x7x7xf32>
    %119 = math.exp %118 : vector<8x7x7xf32>
    %cst_26 = arith.constant dense<0.000000e+00> : vector<8x7xf32>
    %120 = vector.multi_reduction <add>, %119, %cst_26 [2] : vector<8x7x7xf32> to vector<8x7xf32>
    %121 = vector.shape_cast %120 : vector<8x7xf32> to vector<8x7x1xf32>
    %122 = tpu.reciprocal %121 {approx = true} : vector<8x7x1xf32> -> vector<8x7x1xf32>
    %123 = vector.broadcast %122 : vector<8x7x1xf32> to vector<8x7x7xf32>
    %124 = arith.mulf %119, %123 : vector<8x7x7xf32>
    %125 = arith.truncf %124 : vector<8x7x7xf32> to vector<8x7x7xbf16>
    "tpu.trace_start"() <{level = 10 : i32, message = "gqk,gkd->gqd"}> : () -> ()
    %cst_27 = arith.constant dense<0.000000e+00> : vector<8x7x8xf32>
    %126 = tpu.matmul %125, %107, %cst_27 {dimension_numbers = #tpu.dot_dimension_numbers<[2], [1], [1], [2], [0, 0, 0, 1, 1, 2], [0], [0]>} : vector<8x7x7xbf16>, vector<8x7x8xbf16>, vector<8x7x8xf32> -> vector<8x7x8xf32>
    "tpu.trace_stop"() : () -> ()
    %127 = vector.extract_strided_slice %126 {offsets = [0, 0, 0], sizes = [1, 7, 8], strides = [1, 1, 1]} : vector<8x7x8xf32> to vector<1x7x8xf32>
    %128 = vector.shape_cast %127 : vector<1x7x8xf32> to vector<7x8xf32>
    %129 = vector.extract_strided_slice %71 {offsets = [0, 0], sizes = [7, 1], strides = [1, 1]} : vector<14x4xf32> to vector<7x1xf32>
    %130 = vector.broadcast %129 : vector<7x1xf32> to vector<7x8xf32>
    %131 = arith.mulf %128, %130 : vector<7x8xf32>
    %132 = vector.extract_strided_slice %126 {offsets = [1, 0, 0], sizes = [1, 7, 8], strides = [1, 1, 1]} : vector<8x7x8xf32> to vector<1x7x8xf32>
    %133 = vector.shape_cast %132 : vector<1x7x8xf32> to vector<7x8xf32>
    %134 = vector.extract_strided_slice %71 {offsets = [0, 1], sizes = [7, 1], strides = [1, 1]} : vector<14x4xf32> to vector<7x1xf32>
    %135 = vector.broadcast %134 : vector<7x1xf32> to vector<7x8xf32>
    %136 = arith.mulf %133, %135 : vector<7x8xf32>
    %137 = vector.extract_strided_slice %126 {offsets = [2, 0, 0], sizes = [1, 7, 8], strides = [1, 1, 1]} : vector<8x7x8xf32> to vector<1x7x8xf32>
    %138 = vector.shape_cast %137 : vector<1x7x8xf32> to vector<7x8xf32>
    %139 = vector.extract_strided_slice %71 {offsets = [0, 2], sizes = [7, 1], strides = [1, 1]} : vector<14x4xf32> to vector<7x1xf32>
    %140 = vector.broadcast %139 : vector<7x1xf32> to vector<7x8xf32>
    %141 = arith.mulf %138, %140 : vector<7x8xf32>
    %142 = vector.extract_strided_slice %126 {offsets = [3, 0, 0], sizes = [1, 7, 8], strides = [1, 1, 1]} : vector<8x7x8xf32> to vector<1x7x8xf32>
    %143 = vector.shape_cast %142 : vector<1x7x8xf32> to vector<7x8xf32>
    %144 = vector.extract_strided_slice %71 {offsets = [0, 3], sizes = [7, 1], strides = [1, 1]} : vector<14x4xf32> to vector<7x1xf32>
    %145 = vector.broadcast %144 : vector<7x1xf32> to vector<7x8xf32>
    %146 = arith.mulf %143, %145 : vector<7x8xf32>
    %147 = tpu.concatenate %131, %136, %141, %146 in 1 : vector<7x8xf32>, vector<7x8xf32>, vector<7x8xf32>, vector<7x8xf32> -> vector<7x32xf32>
    %148 = vector.extract_strided_slice %126 {offsets = [4, 0, 0], sizes = [1, 7, 8], strides = [1, 1, 1]} : vector<8x7x8xf32> to vector<1x7x8xf32>
    %149 = vector.shape_cast %148 : vector<1x7x8xf32> to vector<7x8xf32>
    %150 = vector.extract_strided_slice %71 {offsets = [7, 0], sizes = [7, 1], strides = [1, 1]} : vector<14x4xf32> to vector<7x1xf32>
    %151 = vector.broadcast %150 : vector<7x1xf32> to vector<7x8xf32>
    %152 = arith.mulf %149, %151 : vector<7x8xf32>
    %153 = vector.extract_strided_slice %126 {offsets = [5, 0, 0], sizes = [1, 7, 8], strides = [1, 1, 1]} : vector<8x7x8xf32> to vector<1x7x8xf32>
    %154 = vector.shape_cast %153 : vector<1x7x8xf32> to vector<7x8xf32>
    %155 = vector.extract_strided_slice %71 {offsets = [7, 1], sizes = [7, 1], strides = [1, 1]} : vector<14x4xf32> to vector<7x1xf32>
    %156 = vector.broadcast %155 : vector<7x1xf32> to vector<7x8xf32>
    %157 = arith.mulf %154, %156 : vector<7x8xf32>
    %158 = vector.extract_strided_slice %126 {offsets = [6, 0, 0], sizes = [1, 7, 8], strides = [1, 1, 1]} : vector<8x7x8xf32> to vector<1x7x8xf32>
    %159 = vector.shape_cast %158 : vector<1x7x8xf32> to vector<7x8xf32>
    %160 = vector.extract_strided_slice %71 {offsets = [7, 2], sizes = [7, 1], strides = [1, 1]} : vector<14x4xf32> to vector<7x1xf32>
    %161 = vector.broadcast %160 : vector<7x1xf32> to vector<7x8xf32>
    %162 = arith.mulf %159, %161 : vector<7x8xf32>
    %163 = vector.extract_strided_slice %126 {offsets = [7, 0, 0], sizes = [1, 7, 8], strides = [1, 1, 1]} : vector<8x7x8xf32> to vector<1x7x8xf32>
    %164 = vector.shape_cast %163 : vector<1x7x8xf32> to vector<7x8xf32>
    %165 = vector.extract_strided_slice %71 {offsets = [7, 3], sizes = [7, 1], strides = [1, 1]} : vector<14x4xf32> to vector<7x1xf32>
    %166 = vector.broadcast %165 : vector<7x1xf32> to vector<7x8xf32>
    %167 = arith.mulf %164, %166 : vector<7x8xf32>
    %168 = tpu.concatenate %152, %157, %162, %167 in 1 : vector<7x8xf32>, vector<7x8xf32>, vector<7x8xf32>, vector<7x8xf32> -> vector<7x32xf32>
    %169 = tpu.concatenate %147, %168 in 0 : vector<7x32xf32>, vector<7x32xf32> -> vector<14x32xf32>
    %170 = vector.extract_strided_slice %5 {offsets = [0, 66], sizes = [32, 32], strides = [1, 1]} : vector<32x162xbf16> to vector<32x32xbf16>
    %171 = arith.truncf %169 : vector<14x32xf32> to vector<14x32xbf16>
    %cst_28 = arith.constant dense<0.000000e+00> : vector<14x32xf32>
    %172 = tpu.matmul %171, %170, %cst_28 {dimension_numbers = #tpu.dot_dimension_numbers<[1], [0], [0], [1], [0, 0, 1, 1], [], []>} : vector<14x32xbf16>, vector<32x32xbf16>, vector<14x32xf32> -> vector<14x32xf32>
    %173 = vector.broadcast %10 : vector<1x32xf32> to vector<14x32xf32>
    %174 = arith.addf %172, %173 : vector<14x32xf32>
    %175 = arith.addf %3, %174 : vector<14x32xf32>
    %cst_29 = arith.constant dense<0.000000e+00> : vector<14xf32>
    %176 = vector.multi_reduction <add>, %175, %cst_29 [1] : vector<14x32xf32> to vector<14xf32>
    %177 = vector.shape_cast %176 : vector<14xf32> to vector<14x1xf32>
    %cst_30 = arith.constant 3.200000e+01 : f32
    %178 = vector.broadcast %cst_30 : f32 to vector<14x1xf32>
    %179 = arith.divf %177, %178 : vector<14x1xf32>
    %180 = vector.broadcast %179 : vector<14x1xf32> to vector<14x32xf32>
    %181 = arith.subf %175, %180 : vector<14x32xf32>
    %182 = arith.mulf %181, %181 : vector<14x32xf32>
    %cst_31 = arith.constant dense<0.000000e+00> : vector<14xf32>
    %183 = vector.multi_reduction <add>, %182, %cst_31 [1] : vector<14x32xf32> to vector<14xf32>
    %184 = vector.shape_cast %183 : vector<14xf32> to vector<14x1xf32>
    %cst_32 = arith.constant 3.200000e+01 : f32
    %185 = vector.broadcast %cst_32 : f32 to vector<14x1xf32>
    %186 = arith.divf %184, %185 : vector<14x1xf32>
    %187 = vector.broadcast %179 : vector<14x1xf32> to vector<14x32xf32>
    %188 = arith.subf %175, %187 : vector<14x32xf32>
    %cst_33 = arith.constant 9.99999974E-6 : f32
    %189 = vector.broadcast %cst_33 : f32 to vector<14x1xf32>
    %190 = arith.addf %186, %189 : vector<14x1xf32>
    %191 = math.rsqrt %190 : vector<14x1xf32>
    %192 = vector.broadcast %191 : vector<14x1xf32> to vector<14x32xf32>
    %193 = arith.mulf %188, %192 : vector<14x32xf32>
    %194 = vector.broadcast %11 : vector<1x32xf32> to vector<14x32xf32>
    %195 = arith.mulf %193, %194 : vector<14x32xf32>
    %196 = vector.broadcast %12 : vector<1x32xf32> to vector<14x32xf32>
    %197 = arith.addf %195, %196 : vector<14x32xf32>
    %198 = vector.extract_strided_slice %5 {offsets = [0, 98], sizes = [32, 32], strides = [1, 1]} : vector<32x162xbf16> to vector<32x32xbf16>
    %199 = arith.truncf %197 : vector<14x32xf32> to vector<14x32xbf16>
    %cst_34 = arith.constant dense<0.000000e+00> : vector<14x32xf32>
    %200 = tpu.matmul %199, %198, %cst_34 {dimension_numbers = #tpu.dot_dimension_numbers<[1], [0], [0], [1], [0, 0, 1, 1], [], []>} : vector<14x32xbf16>, vector<32x32xbf16>, vector<14x32xf32> -> vector<14x32xf32>
    %201 = vector.broadcast %13 : vector<1x32xf32> to vector<14x32xf32>
    %202 = arith.addf %200, %201 : vector<14x32xf32>
    %cst_35 = arith.constant 0.000000e+00 : f32
    %203 = vector.broadcast %cst_35 : f32 to vector<14x32xf32>
    %204 = arith.maximumf %202, %203 : vector<14x32xf32>
    %205 = vector.extract_strided_slice %5 {offsets = [0, 130], sizes = [32, 32], strides = [1, 1]} : vector<32x162xbf16> to vector<32x32xbf16>
    %206 = arith.truncf %204 : vector<14x32xf32> to vector<14x32xbf16>
    %cst_36 = arith.constant dense<0.000000e+00> : vector<14x32xf32>
    %207 = tpu.matmul %206, %205, %cst_36 {dimension_numbers = #tpu.dot_dimension_numbers<[1], [0], [0], [1], [0, 0, 1, 1], [], []>} : vector<14x32xbf16>, vector<32x32xbf16>, vector<14x32xf32> -> vector<14x32xf32>
    %208 = vector.broadcast %14 : vector<1x32xf32> to vector<14x32xf32>
    %209 = arith.addf %207, %208 : vector<14x32xf32>
    %210 = arith.addf %197, %209 : vector<14x32xf32>
    %cst_37 = arith.constant dense<0.000000e+00> : vector<14xf32>
    %211 = vector.multi_reduction <add>, %210, %cst_37 [1] : vector<14x32xf32> to vector<14xf32>
    %212 = vector.shape_cast %211 : vector<14xf32> to vector<14x1xf32>
    %cst_38 = arith.constant 3.200000e+01 : f32
    %213 = vector.broadcast %cst_38 : f32 to vector<14x1xf32>
    %214 = arith.divf %212, %213 : vector<14x1xf32>
    %215 = vector.broadcast %214 : vector<14x1xf32> to vector<14x32xf32>
    %216 = arith.subf %210, %215 : vector<14x32xf32>
    %217 = arith.mulf %216, %216 : vector<14x32xf32>
    %cst_39 = arith.constant dense<0.000000e+00> : vector<14xf32>
    %218 = vector.multi_reduction <add>, %217, %cst_39 [1] : vector<14x32xf32> to vector<14xf32>
    %219 = vector.shape_cast %218 : vector<14xf32> to vector<14x1xf32>
    %cst_40 = arith.constant 3.200000e+01 : f32
    %220 = vector.broadcast %cst_40 : f32 to vector<14x1xf32>
    %221 = arith.divf %219, %220 : vector<14x1xf32>
    %222 = vector.broadcast %214 : vector<14x1xf32> to vector<14x32xf32>
    %223 = arith.subf %210, %222 : vector<14x32xf32>
    %cst_41 = arith.constant 9.99999974E-6 : f32
    %224 = vector.broadcast %cst_41 : f32 to vector<14x1xf32>
    %225 = arith.addf %221, %224 : vector<14x1xf32>
    %226 = math.rsqrt %225 : vector<14x1xf32>
    %227 = vector.broadcast %226 : vector<14x1xf32> to vector<14x32xf32>
    %228 = arith.mulf %223, %227 : vector<14x32xf32>
    %229 = vector.broadcast %15 : vector<1x32xf32> to vector<14x32xf32>
    %230 = arith.mulf %228, %229 : vector<14x32xf32>
    %231 = vector.broadcast %16 : vector<1x32xf32> to vector<14x32xf32>
    %232 = arith.addf %230, %231 : vector<14x32xf32>
    %c0_42 = arith.constant 0 : index
    %c0_43 = arith.constant 0 : index
    %233 = vector.load %arg10[%c0_42, %c0_43] : memref<14x32xf32, #tpu.memory_space<vmem>>, vector<14x32xf32>
    tpu.vector_store %arg10[%c0_42, %c0_43], %232 {strides = array<i32>} : memref<14x32xf32, #tpu.memory_space<vmem>>, vector<14x32xf32>,
    %cst_44 = arith.constant dense<0.000000e+00> : vector<2xf32>
    %234 = vector.multi_reduction <add>, %68, %cst_44 [0] : vector<14x2xf32> to vector<2xf32>
    %235 = vector.shape_cast %234 : vector<2xf32> to vector<1x2xf32>
    %cst_45 = arith.constant 1.400000e+01 : f32
    %236 = vector.broadcast %cst_45 : f32 to vector<1x2xf32>
    %237 = arith.divf %235, %236 : vector<1x2xf32>
    %cst_46 = arith.constant dense<0.000000e+00> : vector<2xf32>
    %238 = vector.multi_reduction <add>, %38, %cst_46 [0] : vector<14x2xf32> to vector<2xf32>
    %239 = vector.shape_cast %238 : vector<2xf32> to vector<1x2xf32>
    %cst_47 = arith.constant 1.400000e+01 : f32
    %240 = vector.broadcast %cst_47 : f32 to vector<1x2xf32>
    %241 = arith.divf %239, %240 : vector<1x2xf32>
    %c0_48 = arith.constant 0 : index
    %c0_49 = arith.constant 0 : index
    %242 = vector.load %arg9[%c0_48, %c0_49] : memref<1x1xf32, #tpu.memory_space<vmem>>, vector<1x1xf32>
    %243 = arith.mulf %237, %241 : vector<1x2xf32>
    %cst_50 = arith.constant dense<0.000000e+00> : vector<1xf32>
    %244 = vector.multi_reduction <add>, %243, %cst_50 [1] : vector<1x2xf32> to vector<1xf32>
    %245 = vector.shape_cast %244 : vector<1xf32> to vector<1x1xf32>
    %cst_51 = arith.constant 2.000000e+00 : f32
    %246 = vector.broadcast %cst_51 : f32 to vector<1x1xf32>
    %247 = arith.mulf %246, %245 : vector<1x1xf32>
    %248 = arith.addf %242, %247 : vector<1x1xf32>
    %c0_52 = arith.constant 0 : index
    %c0_53 = arith.constant 0 : index
    %249 = vector.load %arg9[%c0_52, %c0_53] : memref<1x1xf32, #tpu.memory_space<vmem>>, vector<1x1xf32>
    tpu.vector_store %arg9[%c0_52, %c0_53], %248 {strides = array<i32>} : memref<1x1xf32, #tpu.memory_space<vmem>>, vector<1x1xf32>,
    %c0_i32_54 = arith.constant 0 : i32
    %250 = arith.cmpi eq, %arg0, %c0_i32_54 : i32
    %251 = arith.extui %250 : i1 to i32
    %c0_i32_55 = arith.constant 0 : i32
    %252 = arith.cmpi ne, %251, %c0_i32_55 : i32
    scf.if %252 {
      %c0_56 = arith.constant 0 : index
      %c0_57 = arith.constant 0 : index
      %253 = vector.load %arg6[%c0_56, %c0_57] : memref<64x96xbf16, #tpu.memory_space<vmem>>, vector<64x96xbf16>
      %c0_58 = arith.constant 0 : index
      %c0_59 = arith.constant 0 : index
      %254 = vector.load %arg7[%c0_58, %c0_59] : memref<2x97xf32, #tpu.memory_space<vmem>>, vector<2x97xf32>
      %255 = vector.extract_strided_slice %253 {offsets = [0, 0], sizes = [32, 64], strides = [1, 1]} : vector<64x96xbf16> to vector<32x64xbf16>
      %256 = arith.truncf %232 : vector<14x32xf32> to vector<14x32xbf16>
      %cst_60 = arith.constant dense<0.000000e+00> : vector<14x64xf32>
      %257 = tpu.matmul %256, %255, %cst_60 {dimension_numbers = #tpu.dot_dimension_numbers<[1], [0], [0], [1], [0, 0, 1, 1], [], []>} : vector<14x32xbf16>, vector<32x64xbf16>, vector<14x64xf32> -> vector<14x64xf32>
      %c0_61 = arith.constant 0 : index
      %c0_62 = arith.constant 0 : index
      %258 = vector.load %arg3[%c0_61, %c0_62] : memref<14x32xf32, #tpu.memory_space<vmem>>, vector<14x32xf32>
      %259 = vector.extract_strided_slice %253 {offsets = [32, 0], sizes = [32, 64], strides = [1, 1]} : vector<64x96xbf16> to vector<32x64xbf16>
      %260 = arith.truncf %258 : vector<14x32xf32> to vector<14x32xbf16>
      %cst_63 = arith.constant dense<0.000000e+00> : vector<14x64xf32>
      %261 = tpu.matmul %260, %259, %cst_63 {dimension_numbers = #tpu.dot_dimension_numbers<[1], [0], [0], [1], [0, 0, 1, 1], [], []>} : vector<14x32xbf16>, vector<32x64xbf16>, vector<14x64xf32> -> vector<14x64xf32>
      %262 = arith.addf %257, %261 : vector<14x64xf32>
      %263 = vector.extract_strided_slice %254 {offsets = [0, 0], sizes = [1, 64], strides = [1, 1]} : vector<2x97xf32> to vector<1x64xf32>
      %264 = vector.broadcast %263 : vector<1x64xf32> to vector<14x64xf32>
      %265 = arith.addf %262, %264 : vector<14x64xf32>
      %cst_64 = arith.constant 0.000000e+00 : f32
      %266 = vector.broadcast %cst_64 : f32 to vector<14x64xf32>
      %267 = arith.maximumf %265, %266 : vector<14x64xf32>
      %268 = vector.extract_strided_slice %253 {offsets = [0, 64], sizes = [64, 32], strides = [1, 1]} : vector<64x96xbf16> to vector<64x32xbf16>
      %269 = arith.truncf %267 : vector<14x64xf32> to vector<14x64xbf16>
      %cst_65 = arith.constant dense<0.000000e+00> : vector<14x32xf32>
      %270 = tpu.matmul %269, %268, %cst_65 {dimension_numbers = #tpu.dot_dimension_numbers<[1], [0], [0], [1], [0, 0, 1, 1], [], []>} : vector<14x64xbf16>, vector<64x32xbf16>, vector<14x32xf32> -> vector<14x32xf32>
      %271 = vector.extract_strided_slice %254 {offsets = [0, 64], sizes = [1, 32], strides = [1, 1]} : vector<2x97xf32> to vector<1x32xf32>
      %272 = vector.broadcast %271 : vector<1x32xf32> to vector<14x32xf32>
      %273 = arith.addf %270, %272 : vector<14x32xf32>
      %cst_66 = arith.constant 0.000000e+00 : f32
      %274 = vector.broadcast %cst_66 : f32 to vector<14x32xf32>
      %275 = arith.maximumf %273, %274 : vector<14x32xf32>
      %276 = vector.extract_strided_slice %254 {offsets = [1, 64], sizes = [1, 32], strides = [1, 1]} : vector<2x97xf32> to vector<1x32xf32>
      %277 = vector.broadcast %276 : vector<1x32xf32> to vector<14x32xf32>
      %278 = arith.mulf %275, %277 : vector<14x32xf32>
      %cst_67 = arith.constant dense<0.000000e+00> : vector<14xf32>
      %279 = vector.multi_reduction <add>, %278, %cst_67 [1] : vector<14x32xf32> to vector<14xf32>
      %280 = vector.shape_cast %279 : vector<14xf32> to vector<14x1xf32>
      %281 = vector.extract_strided_slice %254 {offsets = [0, 96], sizes = [1, 1], strides = [1, 1]} : vector<2x97xf32> to vector<1x1xf32>
      %282 = vector.broadcast %281 : vector<1x1xf32> to vector<14x1xf32>
      %283 = arith.addf %280, %282 : vector<14x1xf32>
      %284 = arith.negf %283 : vector<14x1xf32>
      %285 = math.exp %284 : vector<14x1xf32>
      %cst_68 = arith.constant 1.000000e+00 : f32
      %286 = vector.broadcast %cst_68 : f32 to vector<14x1xf32>
      %287 = arith.addf %286, %285 : vector<14x1xf32>
      %288 = arith.divf %286, %287 : vector<14x1xf32>
      %c0_69 = arith.constant 0 : index
      %c0_70 = arith.constant 0 : index
      %289 = vector.load %arg8[%c0_69, %c0_70] : memref<14x1xf32, #tpu.memory_space<vmem>>, vector<14x1xf32>
      tpu.vector_store %arg8[%c0_69, %c0_70], %288 {strides = array<i32>} : memref<14x1xf32, #tpu.memory_space<vmem>>, vector<14x1xf32>,
    } else {
    }
    return
  }
  func.func @transform_0(%arg0: i32) -> (i32, i32) {
    %c0_i32 = arith.constant 0 : i32
    %c0_i32_0 = arith.constant 0 : i32
    %c0_i32_1 = arith.constant 0 : i32
    return %c0_i32, %c0_i32_0 : i32, i32
  }
  func.func @transform_1(%arg0: i32) -> (i32, i32) {
    %c0_i32 = arith.constant 0 : i32
    %c0_i32_0 = arith.constant 0 : i32
    %c0_i32_1 = arith.constant 0 : i32
    return %c0_i32, %c0_i32_0 : i32, i32
  }
  func.func @transform_2(%arg0: i32) -> (i32, i32) {
    %c0_i32 = arith.constant 0 : i32
    %c0_i32_0 = arith.constant 0 : i32
    %c0_i32_1 = arith.constant 0 : i32
    return %c0_i32, %c0_i32_0 : i32, i32
  }
  func.func @transform_3(%arg0: i32) -> (i32, i32, i32) {
    %c0_i32 = arith.constant 0 : i32
    %c0_i32_0 = arith.constant 0 : i32
    %c0_i32_1 = arith.constant 0 : i32
    return %arg0, %c0_i32, %c0_i32_0 : i32, i32, i32
  }
  func.func @transform_4(%arg0: i32) -> (i32, i32, i32) {
    %c0_i32 = arith.constant 0 : i32
    %c0_i32_0 = arith.constant 0 : i32
    %c0_i32_1 = arith.constant 0 : i32
    return %arg0, %c0_i32, %c0_i32_0 : i32, i32, i32
  }
  func.func @transform_5(%arg0: i32) -> (i32, i32) {
    %c0_i32 = arith.constant 0 : i32
    %c0_i32_0 = arith.constant 0 : i32
    %c0_i32_1 = arith.constant 0 : i32
    return %c0_i32, %c0_i32_0 : i32, i32
  }
  func.func @transform_6(%arg0: i32) -> (i32, i32) {
    %c0_i32 = arith.constant 0 : i32
    %c0_i32_0 = arith.constant 0 : i32
    %c0_i32_1 = arith.constant 0 : i32
    return %c0_i32, %c0_i32_0 : i32, i32
  }
  func.func @transform_7(%arg0: i32) -> (i32, i32) {
    %c0_i32 = arith.constant 0 : i32
    %c0_i32_0 = arith.constant 0 : i32
    %c0_i32_1 = arith.constant 0 : i32
    return %c0_i32, %c0_i32_0 : i32, i32
  }
  func.func @transform_8(%arg0: i32) -> (i32, i32) {
    %c0_i32 = arith.constant 0 : i32
    %c0_i32_0 = arith.constant 0 : i32
    %c0_i32_1 = arith.constant 0 : i32
    return %c0_i32, %c0_i32_0 : i32, i32
  }
}

</mosaic_0001>

<bundles_post_ra>
// kernel: router_simplekt_forward.1
= control target key start
LH: loop header
LB: loop body
LE: loop exit
PB: predicated region body
PF: predicated region fallthrough
CT: control target
= control target key end

     0   :  { %vm36_vm0 = vcmask 261120   ;;  %vm38_vm1 = vcmask 259072   ;;  %s2037_s0 = inlined_call_operand.vmem [shape: f32[14,32], index: 0, kind: input, shape index: {}]   ;;  %s2038_s1 = inlined_call_operand.vmem [shape: f32[14,32], index: 1, kind: input, shape index: {}]   ;;  %s2039_s2 = inlined_call_operand.vmem [shape: f32[14,32], index: 2, kind: input, shape index: {}]   ;;  %s2040_s3 = inlined_call_operand.vmem [shape: bf16[1,32,162], index: 3, kind: input, shape index: {}]   ;;  %s2041_s4 = inlined_call_operand.vmem [shape: f32[1,9,32], index: 4, kind: input, shape index: {}]   ;;  %s2042_s5 = inlined_call_operand.vmem [shape: bf16[64,96], index: 5, kind: input, shape index: {}]   ;;  %s2043_s6 = inlined_call_operand.vmem [shape: f32[2,97], index: 6, kind: input, shape index: {}]   ;;  %s2044_s7 = inlined_call_operand.vmem [shape: f32[14,1], index: 7, kind: output, shape index: {0}]   ;;  %s2045_s8 = inlined_call_operand.hbm [shape: f32[1,1], index: 8, kind: output, shape index: {1}]  }
   0x1   :  { %v1317_v0 = vld [vmem:[%s2040_s3 + $0x10] sm:$0xf]  ;;  %v1376_v1 = vld [vmem:[%s2040_s3 + $0x14] sm:$0xf0]  ;;  %v1313_v2 = vld [vmem:[%s2040_s3] sm:$0xf] }
   0x2   :  { %v1601_v3 = vor.u32 %v1376_v1, %v1317_v0  ;;  %v1374_v4 = vld [vmem:[%s2040_s3 + $0x4] sm:$0xf0]  ;;  %v34_v5 = vld [vmem:[%s2037_s0] sm:$0xff] }
   0x3   :  { %v35_v6 = vld [vmem:[%s2037_s0 + $0x8] sm:$0x3f]  ;;  %37 = vst.msk [vmem:[#allocation2] sm:$0xff] %vm36_vm0, %v34_v5  ;;  %v1614_v7 = vor.u32 %v1374_v4, %v1313_v2 }
   0x4   :  { %81 = vmatpush.bf16.msra.mxu0 %v1601_v3  ;;  %39 = vst.msk [vmem:[#allocation2 + $0x8] sm:$0x3f] %vm38_vm1, %v35_v6 }
   0x5   :  { %14 = vsyncpa [#allocation5], 0  ;;  %v1622_v11 = vld [vmem:[%s2041_s4] sm:$0xff]  ;;  %vm119_vm2 = vcmask 277760   ;;  %vm374_vm3 = vcmask 64512   ;;  %vm123_vm4 = vcmask 275712   ;;  %v42_v26 = vlaneseq }
   0x6   :  { %v89_v12 = vperm.slane %v1622_v11, 0  ;;  %vm320_vm5 = vcmask 1040384   ;;  %s1523_s18 = smov 120   ;;  %v1524_v29 = vmov -1e+30   ;;  %vm48_vm7 = vcmask 55296  }
   0x7   :  { %v43_v27 = vshrl.u32 %v42_v26, 7  ;;  %v1639_v28 = vand.u32 127, %v42_v26  ;;  %s1525_s19 = smov 96   ;;  %s1526_s20 = smov 94   ;;  %vm141_vm8 = vcmask 15360   ;;  %vm145_vm9 = vcmask 13312  }
   0x8   :  { %82 = vmatpush.bf16.msra.mxu0 %v1614_v7  ;;  %s1527_s21 = smov 112   ;;  %s1528_s22 = smov 104  }
   0x9   :  { %vm46_vm6 = vcmp.le.s32.totalorder %v1639_v28, %v43_v27  ;;  %s1529_s23 = smov 32   ;;  %s1537_s28 = smov 62  }
   0xa   :  { %v50_v8 = vld [vmem:[#allocation2] sm:$0xff]  ;;  %v47_v30 = vsel %vm46_vm6, 0.0, %v1524_v29  ;;  %s1538_s29 = smov 16   ;;  %s1539_s30 = smov 8  }
   0xb   :  { %v51_v9 = vld [vmem:[#allocation2 + $0x8] sm:$0x3f]  ;;  %49 = vst.msk [vmem:[#allocation3] sm:$0x7f] %vm48_vm7, %v47_v30  ;;  %s1540_s9 = smov 24   ;;  %s1541_s12 = smov 30  }
   0xc   :  { %v58_v10 = vpack.c.bf16 %v51_v9, %v50_v8  ;;  %s1545_s24 = smov 64   ;;  %s1300_s15 = sshll.u32 %s2045_s8, 4  ;;  %s1301_s15 = int_to_ptr.hbm [resolvable:$true] %s1300_s15 }
   0xe   :  { %1319 = vmatmul.msk.bf16.vlgmr.msra.gmra.mxu0 %vm36_vm0, %v58_v10 }
  0x8b   :  { %v84_v13 = vpop.f32.mrf.mxu0 }
  0x8c   :  { %v90_v14 = vadd.f32 %v89_v12, %v84_v13  ;;  %v120_v15 = vsel %vm119_vm2, %v84_v13, -inf }
  0x8d   :  { %121 = vmax.xlane.f32.xlu0 %v120_v15 }
  0x8e   :  { %v334_v16 = vpack.c.bf16 %v90_v14, %v90_v14  ;;  %v321_v22 = vrot.slane %v90_v14, 7 }
  0x90   :  { %v376_v17 = vsel %vm374_vm3, %v334_v16, 0 }
  0x91   :  { %385 = vmatpush.bf16.xpose.msra.mxu2 %v376_v17 }
  0x93   :  { %v86_v18 = vpop.f32.mrf.mxu0 }
  0x94   :  { %v91_v19 = vadd.f32 %v89_v12, %v86_v18  ;;  %v124_v20 = vsel %vm123_vm4, %v86_v18, -inf }
  0x95   :  { %125 = vmax.xlane.f32.xlu0 %v124_v20 }
  0x96   :  { %v322_v21 = vrot.slane %v91_v19, 7 }
  0x98   :  { %1325 = vmatmul.msk.bf16.vlgmr.msra.gmra.mxu2 %vm374_vm3, %v334_v16  ;;  %v1630_v23 = vsel %vm320_vm5, %v321_v22, %v322_v21 }
  0x99   :  { %v338_v24 = vpack.c.bf16 %v1630_v23, %v1630_v23 }
  0x9b   :  { %v440_v25 = vsel %vm374_vm3, %v338_v24, 0 }
  0x9c   :  { %449 = vmatpush.bf16.xpose.msrb.mxu2 %v440_v25 }
  0xa8   :  { %1329 = vmatmul.msk.bf16.vlgmr.msrb.gmra.mxu2 %vm374_vm3, %v338_v24 }
  0xa9   :  { %310 = vrot.lane.b32.xlu0 %v90_v14, %s1523_s18 }
  0xb1   :  { %325 = vrot.lane.b32.xlu0 %v1630_v23, %s1523_s18 }
 0x100   :  { %v122_v31 = vpop.xlane.xlu0 %121 }
 0x101   :  { %v127_v32 = vsub.f32 %v84_v13, %v122_v31  ;;  %v92_v13 = vld [vmem:[%s2038_s1] sm:$0xff] }
 0x103   :  { %v129_v33 = vmul.f32 1.442695, %v127_v32 }
 0x105   :  { %1434 = vpow2.f32 %v129_v33 }
 0x108   :  { %v126_v34 = vpop.xlane.xlu0 %125 }
 0x109   :  { %v128_v35 = vsub.f32 %v86_v18, %v126_v34 }
 0x10b   :  { %v1643_v36 = vpop.eup %1434  ;;  %v131_v37 = vmul.f32 1.442695, %v128_v35 }
 0x10c   :  { %135 = vrot.lane.b32.xlu1 %v1643_v36, %s1525_s19 }
 0x10d   :  { %1436 = vpow2.f32 %v131_v37 }
 0x113   :  { %v1647_v38 = vpop.eup %1436 }
 0x114   :  { %137 = vrot.lane.b32.xlu1 %v1647_v38, %s1525_s19 }
 0x11b   :  { %v1651_v39 = vpop.f32.mrf.mxu2  ;;  %v311_v40 = vpop.permute.xlu0 %310 }
 0x11c   :  { %v335_v41 = vpack.c.bf16 %v311_v40, %v311_v40  ;;  %98 = vrot.lane.b32.xlu1 %v1601_v3, %s1526_s20 }
 0x11e   :  { %v392_v42 = vsel %vm374_vm3, %v335_v41, 0 }
 0x11f   :  { %401 = vmatpush.bf16.xpose.msra.mxu3 %v392_v42 }
 0x123   :  { %v389_v43 = vpop.f32.mrf.mxu2  ;;  %v326_v44 = vpop.permute.xlu0 %325 }
 0x124   :  { %v339_v45 = vpack.c.bf16 %v326_v44, %v326_v44  ;;  %313 = vrot.lane.b32.xlu1 %v90_v14, %s1527_s21 }
 0x126   :  { %1326 = vmatmul.msk.bf16.vlgmr.msra.gmra.mxu3 %vm374_vm3, %v335_v41  ;;  %v456_v46 = vsel %vm374_vm3, %v339_v45, 0 }
 0x127   :  { %465 = vmatpush.bf16.xpose.msrb.mxu3 %v456_v46 }
 0x12b   :  { %v1659_v47 = vpop.f32.mrf.mxu2 }
 0x12c   :  { %316 = vrot.lane.b32.xlu1 %v90_v14, %s1528_s22  ;;  %v93_v14 = vld [vmem:[%s2038_s1 + $0x8] sm:$0x3f]  ;;  %s1532_s1 = smov 98  }
 0x12d   :  { %v94_v21 = vpack.c.bf16 %v93_v14, %v92_v13  ;;  %v507_v14 = vmul.f32 0.35355338, %v1659_v47 }
 0x133   :  { %v453_v48 = vpop.f32.mrf.mxu2 }
 0x134   :  { %328 = vrot.lane.b32.xlu1 %v1630_v23, %s1527_s21 }
 0x136   :  { %1330 = vmatmul.msk.bf16.vlgmr.msrb.gmra.mxu3 %vm374_vm3, %v339_v45 }
 0x17e   :  { %v136_v49 = vpop.permute.xlu1 %135 }
 0x17f   :  { %v142_v50 = vsel %vm141_vm8, %v136_v49, 0.0 }
 0x180   :  { %143 = vadd.xlane.f32.xlu2 %v142_v50 }
 0x186   :  { %v138_v51 = vpop.permute.xlu1 %137 }
 0x187   :  { %v146_v52 = vsel %vm145_vm9, %v138_v51, 0.0 }
 0x188   :  { %147 = vadd.xlane.f32.xlu2 %v146_v52 }
 0x18e   :  { %v99_v53 = vpop.permute.xlu1 %98 }
 0x18f   :  { %111 = vmatpush.bf16.msra.mxu1 %v99_v53 }
 0x196   :  { %v314_v54 = vpop.permute.xlu1 %313 }
 0x197   :  { %v336_v55 = vpack.c.bf16 %v314_v54, %v314_v54 }
 0x199   :  { %v408_v56 = vsel %vm374_vm3, %v336_v55, 0 }
 0x19a   :  { %417 = vmatpush.bf16.xpose.msrb.mxu0 %v408_v56 }
 0x19e   :  { %v317_v57 = vpop.permute.xlu1 %316 }
 0x19f   :  { %v337_v12 = vpack.c.bf16 %v317_v57, %v317_v57 }
 0x1a0   :  { %96 = vrot.lane.b32.xlu2 %v1614_v7, %s1526_s20 }
 0x1a1   :  { %1327 = vmatmul.msk.bf16.vlgmr.msrb.gmra.mxu0 %vm374_vm3, %v336_v55 }
 0x1a6   :  { %v329_v58 = vpop.permute.xlu1 %328 }
 0x1a7   :  { %v340_v59 = vpack.c.bf16 %v329_v58, %v329_v58 }
 0x1a8   :  { %331 = vrot.lane.b32.xlu2 %v1630_v23, %s1528_s22  ;;  %v424_v23 = vsel %vm374_vm3, %v337_v12, 0 }
 0x1a9   :  { %v472_v60 = vsel %vm374_vm3, %v340_v59, 0  ;;  %v1674_v61 = vpop.f32.mrf.mxu3 }
 0x1aa   :  { %481 = vmatpush.bf16.xpose.msra.mxu0 %v472_v60  ;;  %v504_v58 = vmul.f32 0.35355338, %v1674_v61  ;;  %v1707_v60 = vld [vmem:[#allocation3] sm:$0x7f] }
 0x1b0   :  { %189 = vrot.lane.b32.xlu2 %v1639_v28, %s1529_s23 }
 0x1b1   :  { %v405_v62 = vpop.f32.mrf.mxu3  ;;  %1331 = vmatmul.msk.bf16.vlgmr.msra.gmra.mxu0 %vm374_vm3, %v340_v59 }
 0x1b2   :  { %v1710_v62 = vadd.f32 %v1707_v60, %v504_v58 }
 0x1b9   :  { %v1679_v63 = vpop.f32.mrf.mxu3 }
 0x1c1   :  { %v469_v0 = vpop.f32.mrf.mxu3 }
 0x1c2   :  { %v508_v0 = vmul.f32 0.35355338, %v1679_v63 }
 0x1f3   :  { %v144_v1 = vpop.xlane.xlu2 %143 }
 0x1f4   :  { %1438 = vrcp.f32 %v144_v1  ;;  %v160_v8 = vand.u32 2147483648, %v144_v1  ;;  %v158_v10 = vand.u32 2147483647, %v144_v1  ;;  %vm154_vm11 = vweird.f32 %v144_v1 }
 0x1f6   :  { %v161_v17 = vor.u32 1.1754944e-38, %v160_v8  ;;  %vm159_vm13 = vcmp.eq.f32.partialorder %v158_v10, 8.507059e+37 }
 0x1fa   :  { %v1439_v2 = vpop.eup %1438 }
 0x1fb   :  { %v150_v4 = vmul.f32 %v1439_v2, %v144_v1  ;;  %v148_v5 = vpop.xlane.xlu2 %147  ;;  %vm155_vm10 = vweird.f32 %v1439_v2  ;;  %v524_v1 = vsel %vm48_vm7, %v1710_v62, -inf }
 0x1fc   :  { %1440 = vrcp.f32 %v148_v5  ;;  %vm156_vm12 = vmor %vm154_vm11, %vm155_vm10  ;;  %v175_v26 = vand.u32 2147483648, %v148_v5  ;;  %v173_v29 = vand.u32 2147483647, %v148_v5  ;;  %vm169_vm15 = vweird.f32 %v148_v5 }
 0x1fd   :  { %v151_v6 = vsub.f32 1.0, %v150_v4  ;;  %v517_v4 = vadd.f32 %v1707_v60, %v508_v0 }
 0x1fe   :  { %v176_v32 = vor.u32 1.1754944e-38, %v175_v26  ;;  %vm174_vm10 = vcmp.eq.f32.partialorder %v173_v29, 8.507059e+37 }
 0x1ff   :  { %v152_v9 = vmul.f32 %v1439_v2, %v151_v6  ;;  %v536_v61 = vsel %vm48_vm7, %v517_v4, -inf }
 0x201   :  { %v153_v15 = vadd.f32 %v1439_v2, %v152_v9 }
 0x202   :  { %v1441_v16 = vpop.eup %1440 }
 0x203   :  { %v157_v18 = vsel %vm156_vm12, %v1439_v2, %v153_v15  ;;  %v165_v19 = vmul.f32 %v1441_v16, %v148_v5  ;;  %v97_v20 = vpop.permute.xlu2 %96  ;;  %vm170_vm14 = vweird.f32 %v1441_v16 }
 0x204   :  { %v162_v22 = vsel %vm159_vm13, %v161_v17, %v157_v18  ;;  %112 = vmatpush.bf16.msra.mxu1 %v97_v20  ;;  %vm171_vm6 = vmor %vm169_vm15, %vm170_vm14  ;;  %v503_v20 = vmul.f32 0.35355338, %v1651_v39  ;;  %vm621_vm15 = vcmask 1042432  }
 0x205   :  { %v1689_v24 = vmul.f32 %v1643_v36, %v162_v22  ;;  %v166_v25 = vsub.f32 1.0, %v165_v19 }
 0x206   :  { %v512_v22 = vadd.f32 %v1707_v60, %v503_v20 }
 0x207   :  { %v167_v27 = vmul.f32 %v1441_v16, %v166_v25  ;;  %1320 = vmatmul.msk.bf16.vlgmr.msra.gmra.mxu1 %vm36_vm0, %v94_v21  ;;  %v181_v30 = vsel %vm119_vm2, %v1689_v24, -inf }
 0x208   :  { %433 = vmatpush.bf16.xpose.msrb.mxu1 %v424_v23  ;;  %182 = vmax.xlane.f32.xlu0 %v181_v30  ;;  %v521_v47 = vsel %vm48_vm7, %v512_v22, -inf  ;;  %v95_v23 = vperm.slane %v1622_v11, 1 }
 0x209   :  { %v168_v31 = vadd.f32 %v1441_v16, %v167_v27 }
 0x20b   :  { %v172_v33 = vsel %vm171_vm6, %v1441_v16, %v168_v31  ;;  %v332_v34 = vpop.permute.xlu2 %331  ;;  %v1733_v16 = vadd.f32 %v1707_v60, %v507_v14  ;;  %vm622_vm6 = vcmask 1043456  }
 0x20c   :  { %v177_v35 = vsel %vm174_vm10, %v176_v32, %v172_v33  ;;  %v341_v36 = vpack.c.bf16 %v332_v34, %v332_v34 }
 0x20d   :  { %v1695_v37 = vmul.f32 %v1647_v38, %v177_v35  ;;  %v533_v17 = vsel %vm48_vm7, %v1733_v16, -inf }
 0x20e   :  { %v488_v40 = vsel %vm374_vm3, %v341_v36, 0 }
 0x20f   :  { %v184_v41 = vsel %vm123_vm4, %v1695_v37, -inf }
 0x210   :  { %497 = vmatpush.bf16.xpose.msra.mxu1 %v488_v40  ;;  %185 = vmax.xlane.f32.xlu1 %v184_v41 }
 0x213   :  { %v190_v46 = vpop.permute.xlu2 %189 }
 0x217   :  { %1328 = vmatmul.msk.bf16.vlgmr.msrb.gmra.mxu1 %vm374_vm3, %v337_v12 }
 0x21e   :  { %v419_v42 = vpop.f32.mrf.mxu0 }
 0x21f   :  { %v505_v18 = vmul.f32 0.35355338, %v419_v42 }
 0x221   :  { %v514_v19 = vadd.f32 %v1707_v60, %v505_v18 }
 0x223   :  { %v527_v21 = vsel %vm48_vm7, %v514_v19, -inf }
 0x226   :  { %v421_v43 = vpop.f32.mrf.mxu0 }
 0x227   :  { %1332 = vmatmul.msk.bf16.vlgmr.msra.gmra.mxu1 %vm374_vm3, %v341_v36  ;;  %v1530_v43 = vmov 65535  }
 0x22e   :  { %v483_v44 = vpop.f32.mrf.mxu0 }
 0x22f   :  { %v509_v5 = vmul.f32 0.35355338, %v483_v44  ;;  %v623_v44 = vsel %vm621_vm15, 4294967295, %v1530_v43 }
 0x231   :  { %v1722_v8 = vadd.f32 %v1707_v60, %v509_v5 }
 0x233   :  { %v539_v63 = vsel %vm48_vm7, %v1722_v8, -inf }
 0x236   :  { %v485_v45 = vpop.f32.mrf.mxu0 }
 0x237   :  { %v1762_v45 = vsel %vm622_vm6, %v623_v44, 0 }
 0x27b   :  { %v183_v48 = vpop.xlane.xlu0 %182 }
 0x27c   :  { %vm187_vm11 = vcmp.ge.f32.partialorder %v1689_v24, %v183_v48 }
 0x27d   :  { %v191_v38 = vsel %vm187_vm11, %v190_v46, 2  ;;  %vm617_vm11 = vcmask 56320  }
 0x27e   :  { %v193_v49 = vsel %vm119_vm2, %v191_v38, 2147483647 }
 0x27f   :  { %v195_v50 = vshra.s32 %v193_v49, 16  ;;  %v194_v31 = vand.u32 65535, %v193_v49 }
 0x281   :  { %v197_v51 = vcvt.s32.f32 %v195_v50  ;;  %v196_v33 = vcvt.s32.f32 %v194_v31 }
 0x283   :  { %v186_v52 = vpop.xlane.xlu1 %185  ;;  %198 = vmin.xlane.f32.xlu2 %v197_v51 }
 0x284   :  { %vm188_vm12 = vcmp.ge.f32.partialorder %v1695_v37, %v186_v52  ;;  %v114_v53 = vpop.f32.mrf.mxu1 }
 0x285   :  { %v192_v54 = vsel %vm188_vm12, %v190_v46, 2  ;;  %v1743_v25 = vadd.f32 %v114_v53, %v95_v23 }
 0x286   :  { %v208_v55 = vsel %vm123_vm4, %v192_v54, 2147483647 }
 0x287   :  { %v210_v56 = vshra.s32 %v208_v55, 16  ;;  %v353_v27 = vrot.slane %v1743_v25, 7  ;;  %v209_v34 = vand.u32 65535, %v208_v55  ;;  %v366_v42 = vpack.c.bf16 %v1743_v25, %v1743_v25 }
 0x289   :  { %v212_v57 = vcvt.s32.f32 %v210_v56  ;;  %v211_v36 = vcvt.s32.f32 %v209_v34  ;;  %v626_v46 = vand.u32 %v1762_v45, %v366_v42 }
 0x28b   :  { %213 = vmin.xlane.f32.xlu0 %v212_v57  ;;  %635 = vmatpush.bf16.msra.mxu2 %v626_v46 }
 0x28c   :  { %v116_v59 = vpop.f32.mrf.mxu1 }
 0x28d   :  { %v117_v26 = vadd.f32 %v116_v59, %v95_v23 }
 0x28f   :  { %v354_v29 = vrot.slane %v117_v26, 7 }
 0x291   :  { %v1747_v30 = vsel %vm320_vm5, %v353_v27, %v354_v29 }
 0x292   :  { %v1405_v39 = vpack.i.bf16 %v1747_v30, %v1743_v25  ;;  %v370_v48 = vpack.c.bf16 %v1747_v30, %v1747_v30 }
 0x293   :  { %525 = vmax.xlane.f32.xlu0 %v524_v1 }
 0x294   :  { %v1715_v2 = vpop.f32.mrf.mxu1  ;;  %v702_v38 = vand.u32 %v1762_v45, %v370_v48 }
 0x295   :  { %v506_v56 = vmul.f32 0.35355338, %v1715_v2 }
 0x296   :  { %711 = vmatpush.bf16.msrb.mxu2 %v702_v38 }
 0x297   :  { %v515_v59 = vadd.f32 %v1707_v60, %v506_v56 }
 0x299   :  { %v530_v1 = vsel %vm48_vm7, %v515_v59, -inf }
 0x29b   :  { %537 = vmax.xlane.f32.xlu0 %v536_v61  ;;  %233 = vrot.lane.b32.xlu2 %v1689_v24, %s1525_s19 }
 0x29c   :  { %v437_v6 = vpop.f32.mrf.mxu1 }
 0x2a3   :  { %540 = vmax.xlane.f32.xlu0 %v539_v63 }
 0x2a4   :  { %v499_v9 = vpop.f32.mrf.mxu1 }
 0x2a5   :  { %v510_v10 = vmul.f32 0.35355338, %v499_v9 }
 0x2a7   :  { %v1727_v12 = vadd.f32 %v1707_v60, %v510_v10 }
 0x2a9   :  { %v542_v13 = vsel %vm48_vm7, %v1727_v12, -inf }
 0x2ab   :  { %543 = vmax.xlane.f32.xlu0 %v542_v13 }
 0x2ac   :  { %v501_v15 = vpop.f32.mrf.mxu1 }
 0x2b3   :  { %534 = vmax.xlane.f32.xlu0 %v533_v17 }
 0x2c4   :  { %528 = vmax.xlane.f32.xlu2 %v527_v21 }
 0x2cc   :  { %522 = vmax.xlane.f32.xlu2 %v521_v47 }
 0x2e4   :  { %1406 = vrot.lane.b32.xlu2 %v1405_v39, %s1523_s18 }
 0x2f6   :  { %v1752_v32 = vpop.xlane.xlu2 %198 }
 0x2f7   :  { %vm200_vm13 = vcmp.eq.f32.partialorder %v197_v51, %v1752_v32  ;;  %v205_v21 = vcvt.f32.s32 %v1752_v32 }
 0x2f8   :  { %v201_v11 = vsel %vm200_vm13, %v196_v33, inf }
 0x2f9   :  { %202 = vmin.xlane.f32.xlu1 %v201_v11  ;;  %v206_v47 = vshll.u32 %v205_v21, 16 }
 0x2fe   :  { %v1755_v35 = vpop.xlane.xlu0 %213  ;;  %v234_v54 = vpop.permute.xlu2 %233 }
 0x2ff   :  { %vm215_vm14 = vcmp.eq.f32.partialorder %v212_v57, %v1755_v35 }
 0x300   :  { %v1758_v40 = vsel %vm215_vm14, %v211_v36, inf }
 0x306   :  { %v526_v41 = vpop.xlane.xlu0 %525 }
 0x307   :  { %v546_v55 = vsub.f32 %v1710_v62, %v526_v41 }
 0x309   :  { %v555_v57 = vmul.f32 1.442695, %v546_v55 }
 0x30e   :  { %v538_v49 = vpop.xlane.xlu0 %537 }
 0x30f   :  { %v550_v50 = vsub.f32 %v517_v4, %v538_v49 }
 0x311   :  { %v563_v51 = vmul.f32 1.442695, %v550_v50 }
 0x312   :  { %235 = vrot.lane.b32.xlu1 %v1695_v37, %s1525_s19 }
 0x313   :  { %1442 = vpow2.f32 %v563_v51 }
 0x314   :  { %1444 = vpow2.f32 %v555_v57 }
 0x316   :  { %v1791_v27 = vpop.xlane.xlu0 %540 }
 0x319   :  { %v1770_v52 = vpop.eup %1442 }
 0x31a   :  { %v584_v53 = vsel %vm48_vm7, %v1770_v52, 0.0  ;;  %v1445_v61 = vpop.eup %1444 }
 0x31b   :  { %585 = vadd.xlane.f32.xlu2 %v584_v53  ;;  %v572_v9 = vsel %vm48_vm7, %v1445_v61, 0.0 }
 0x31e   :  { %v544_v39 = vpop.xlane.xlu0 %543 }
 0x31f   :  { %v552_v31 = vsub.f32 %v1727_v12, %v544_v39 }
 0x321   :  { %v567_v33 = vmul.f32 1.442695, %v552_v31 }
 0x337   :  { %v529_v58 = vpop.xlane.xlu2 %528 }
 0x338   :  { %v547_v0 = vsub.f32 %v514_v19, %v529_v58 }
 0x33a   :  { %v557_v4 = vmul.f32 1.442695, %v547_v0 }
 0x33c   :  { %531 = vmax.xlane.f32.xlu1 %v530_v1  ;;  %1446 = vpow2.f32 %v557_v4 }
 0x33f   :  { %v523_v5 = vpop.xlane.xlu2 %522 }
 0x340   :  { %v545_v6 = vsub.f32 %v512_v22, %v523_v5 }
 0x342   :  { %v553_v63 = vmul.f32 1.442695, %v545_v6  ;;  %v1779_v62 = vpop.eup %1446  ;;  %v1821_v6 = vpop.xlane.xlu0 %534 }
 0x343   :  { %v575_v60 = vsel %vm48_vm7, %v1779_v62, 0.0 }
 0x344   :  { %1448 = vpow2.f32 %v553_v63  ;;  %573 = vadd.xlane.f32.xlu1 %v572_v9 }
 0x345   :  { %1450 = vpow2.f32 %v567_v33 }
 0x347   :  { %v1407_v13 = vpop.permute.xlu2 %1406 }
 0x348   :  { %v1409_v14 = vunpack.i.h.bf16 %v1407_v13  ;;  %v1408_v15 = vunpack.i.l.bf16 %v1407_v13 }
 0x34a   :  { %v1449_v2 = vpop.eup %1448  ;;  %v371_v17 = vpack.c.bf16 %v1409_v14, %v1409_v14  ;;  %v367_v18 = vpack.c.bf16 %v1408_v15, %v1408_v15 }
 0x34b   :  { %v569_v10 = vsel %vm48_vm7, %v1449_v2, 0.0  ;;  %v1801_v32 = vpop.eup %1450 }
 0x34c   :  { %576 = vadd.xlane.f32.xlu1 %v575_v60  ;;  %570 = vadd.xlane.f32.xlu2 %v569_v10  ;;  %v721_v19 = vand.u32 %v1762_v45, %v371_v17  ;;  %v645_v20 = vand.u32 %v1762_v45, %v367_v18  ;;  %v590_v11 = vsel %vm48_vm7, %v1801_v32, 0.0 }
 0x34e   :  { %654 = vmatpush.bf16.msra.mxu3 %v645_v20 }
 0x352   :  { %730 = vmatpush.bf16.msrb.mxu3 %v721_v19 }
 0x365   :  { %346 = vrot.lane.b32.xlu1 %v1743_v25, %s1527_s21 }
 0x36c   :  { %v203_v22 = vpop.xlane.xlu1 %202 }
 0x36d   :  { %v204_v23 = vcvt.f32.s32 %v203_v22  ;;  %v551_v22 = vsub.f32 %v1722_v8, %v1791_v27 }
 0x36f   :  { %v1789_v26 = vadd.s32 %v206_v47, %v204_v23  ;;  %v565_v47 = vmul.f32 1.442695, %v551_v22 }
 0x371   :  { %vm223_vm10 = vcmp.eq.s32.totalorder %v1639_v28, %v1789_v26 }
 0x372   :  { %v1798_v29 = vsel %vm223_vm10, -inf, %v234_v54 }
 0x373   :  { %v241_v56 = vsel %vm141_vm8, %v1798_v29, -inf }
 0x384   :  { %v236_v34 = vpop.permute.xlu1 %235 }
 0x38e   :  { %v586_v43 = vpop.xlane.xlu2 %585 }
 0x38f   :  { %591 = vadd.xlane.f32.xlu1 %v590_v11 }
 0x3a8   :  { %363 = vrot.lane.b32.xlu1 %v1747_v30, %s1528_s22 }
 0x3af   :  { %v532_v36 = vpop.xlane.xlu1 %531 }
 0x3b0   :  { %v548_v41 = vsub.f32 %v515_v59, %v532_v36 }
 0x3b2   :  { %v559_v42 = vmul.f32 1.442695, %v548_v41 }
 0x3b4   :  { %1452 = vpow2.f32 %v559_v42 }
 0x3b7   :  { %v574_v44 = vpop.xlane.xlu1 %573 }
 0x3b8   :  { %1454 = vrcp.f32 %v574_v44 }
 0x3ba   :  { %v1807_v12 = vpop.eup %1452 }
 0x3bb   :  { %v578_v46 = vsel %vm48_vm7, %v1807_v12, 0.0 }
 0x3bc   :  { %579 = vadd.xlane.f32.xlu0 %v578_v46 }
 0x3be   :  { %v1455_v48 = vpop.eup %1454 }
 0x3bf   :  { %v602_v38 = vmul.f32 %v1455_v48, %v1445_v61  ;;  %v571_v49 = vpop.xlane.xlu2 %570  ;;  %v577_v58 = vpop.xlane.xlu1 %576 }
 0x3c0   :  { %1456 = vrcp.f32 %v571_v49 }
 0x3c1   :  { %v610_v50 = vpack.c.bf16 %v602_v38, %v602_v38  ;;  %1458 = vrcp.f32 %v586_v43 }
 0x3c2   :  { %1460 = vrcp.f32 %v577_v58 }
 0x3c3   :  { %1334 = vmatmul.msk.bf16.vlgmr.msra.gmra.mxu3 %vm617_vm11, %v610_v50  ;;  %1462 = vpow2.f32 %v565_v47 }
 0x3c4   :  { %217 = vmin.xlane.f32.xlu0 %v1758_v40 }
 0x3c6   :  { %v1457_v51 = vpop.eup %1456 }
 0x3c7   :  { %v601_v53 = vmul.f32 %v1457_v51, %v1449_v2  ;;  %v1459_v54 = vpop.eup %1458 }
 0x3c8   :  { %v606_v57 = vmul.f32 %v1459_v54, %v1770_v52  ;;  %v1461_v0 = vpop.eup %1460  ;;  %v220_v52 = vcvt.f32.s32 %v1755_v35 }
 0x3c9   :  { %v609_v55 = vpack.c.bf16 %v601_v53, %v601_v53  ;;  %v603_v4 = vmul.f32 %v1461_v0, %v1779_v62  ;;  %v1463_v39 = vpop.eup %1462 }
 0x3ca   :  { %v614_v59 = vpack.c.bf16 %v606_v57, %v606_v57  ;;  %v221_v2 = vshll.u32 %v220_v52, 16  ;;  %v587_v33 = vsel %vm48_vm7, %v1463_v39, 0.0 }
 0x3cb   :  { %1333 = vmatmul.msk.bf16.vlgmr.msra.gmra.mxu2 %vm617_vm11, %v609_v55  ;;  %v611_v61 = vpack.c.bf16 %v603_v4, %v603_v4 }
 0x3cc   :  { %242 = vmax.xlane.f32.xlu0 %v241_v56 }
 0x3d3   :  { %1338 = vmatmul.msk.bf16.vlgmr.msrb.gmra.mxu3 %vm617_vm11, %v614_v59 }
 0x3d7   :  { %v347_v1 = vpop.permute.xlu1 %346 }
 0x3d8   :  { %v368_v40 = vpack.c.bf16 %v347_v1, %v347_v1  ;;  %v549_v1 = vsub.f32 %v1733_v16, %v1821_v6 }
 0x3da   :  { %v664_v5 = vand.u32 %v1762_v45, %v368_v40  ;;  %v561_v4 = vmul.f32 1.442695, %v549_v1 }
 0x3dc   :  { %673 = vmatpush.bf16.msrb.mxu0 %v664_v5 }
 0x3df   :  { %1335 = vmatmul.msk.bf16.vlgmr.msrb.gmra.mxu0 %vm617_vm11, %v611_v61 }
 0x42f   :  { %v580_v63 = vpop.xlane.xlu0 %579 }
 0x430   :  { %1464 = vrcp.f32 %v580_v63 }
 0x436   :  { %v1465_v44 = vpop.eup %1464 }
 0x437   :  { %v218_v9 = vpop.xlane.xlu0 %217  ;;  %v604_v49 = vmul.f32 %v1465_v44, %v1807_v12 }
 0x438   :  { %v219_v60 = vcvt.f32.s32 %v218_v9 }
 0x439   :  { %v612_v53 = vpack.c.bf16 %v604_v49, %v604_v49 }
 0x43a   :  { %v1824_v10 = vadd.s32 %v221_v2, %v219_v60 }
 0x43c   :  { %vm224_vm12 = vcmp.eq.s32.totalorder %v1639_v28, %v1824_v10 }
 0x43d   :  { %v240_v62 = vsel %vm224_vm12, -inf, %v236_v34 }
 0x43e   :  { %v244_v13 = vsel %vm145_vm9, %v240_v62, -inf }
 0x43f   :  { %245 = vmax.xlane.f32.xlu0 %v244_v13  ;;  %v243_v23 = vpop.xlane.xlu0 %242 }
 0x440   :  { %vm247_vm13 = vcmp.ge.f32.partialorder %v1798_v29, %v243_v23  ;;  %v592_v29 = vpop.xlane.xlu1 %591 }
 0x441   :  { %v249_v31 = vsel %vm247_vm13, %v1639_v28, 2  ;;  %1466 = vrcp.f32 %v592_v29 }
 0x442   :  { %1468 = vpow2.f32 %v561_v4 }
 0x446   :  { %v1832_v14 = vpop.f32.mrf.mxu3 }
 0x447   :  { %v1467_v54 = vpop.eup %1466 }
 0x448   :  { %v364_v43 = vpop.permute.xlu1 %363  ;;  %v608_v55 = vmul.f32 %v1467_v54, %v1801_v32  ;;  %v1469_v61 = vpop.eup %1468 }
 0x449   :  { %v373_v46 = vpack.c.bf16 %v364_v43, %v364_v43  ;;  %v581_v63 = vsel %vm48_vm7, %v1469_v61, 0.0 }
 0x44a   :  { %v616_v56 = vpack.c.bf16 %v608_v55, %v608_v55  ;;  %v1533_v55 = vmov 2  }
 0x44b   :  { %v759_v51 = vand.u32 %v1762_v45, %v373_v46  ;;  %1411 = vset.pattern.permute.xlu1 %v1533_v55  ;;  %1413 = vset.pattern.permute.xlu2 %v1533_v55 }
 0x44e   :  { %v658_v15 = vpop.f32.mrf.mxu3  ;;  %v1834_v17 = vpop.f32.mrf.mxu2 }
 0x453   :  { %349 = vrot.lane.b32.xlu0 %v1743_v25, %s1528_s22  ;;  %v251_v25 = vsel %vm141_vm8, %v249_v31, 2147483647 }
 0x454   :  { %v253_v11 = vshra.s32 %v251_v25, 16  ;;  %v252_v57 = vand.u32 65535, %v251_v25 }
 0x456   :  { %v1838_v35 = vpop.f32.mrf.mxu3  ;;  %v639_v18 = vpop.f32.mrf.mxu2  ;;  %v255_v34 = vcvt.s32.f32 %v253_v11  ;;  %v254_v59 = vcvt.s32.f32 %v252_v57 }
 0x45c   :  { %v1840_v19 = vpop.f32.mrf.mxu0 }
 0x45e   :  { %v734_v20 = vpop.f32.mrf.mxu3 }
 0x464   :  { %v677_v21 = vpop.f32.mrf.mxu0 }
 0x47d   :  { %588 = vadd.xlane.f32.xlu0 %v587_v33 }
 0x485   :  { %256 = vmin.xlane.f32.xlu0 %v255_v34 }
 0x4b2   :  { %v246_v36 = vpop.xlane.xlu0 %245 }
 0x4b3   :  { %vm248_vm14 = vcmp.ge.f32.partialorder %v240_v62, %v246_v36 }
 0x4b4   :  { %v250_v8 = vsel %vm248_vm14, %v1639_v28, 2 }
 0x4b5   :  { %v266_v27 = vsel %vm145_vm9, %v250_v8, 2147483647 }
 0x4b6   :  { %v268_v41 = vshra.s32 %v266_v27, 16  ;;  %v267_v40 = vand.u32 65535, %v266_v27 }
 0x4b8   :  { %v270_v42 = vcvt.s32.f32 %v268_v41 }
 0x4ba   :  { %271 = vmin.xlane.f32.xlu0 %v270_v42 }
 0x4c5   :  { %v350_v48 = vpop.permute.xlu0 %349 }
 0x4c6   :  { %v369_v38 = vpack.c.bf16 %v350_v48, %v350_v48 }
 0x4c8   :  { %v683_v50 = vand.u32 %v1762_v45, %v369_v38 }
 0x4ca   :  { %692 = vmatpush.bf16.msrb.mxu1 %v683_v50 }
 0x4cd   :  { %1336 = vmatmul.msk.bf16.vlgmr.msrb.gmra.mxu1 %vm617_vm11, %v612_v53 }
 0x4ce   :  { %768 = vmatpush.bf16.msra.mxu1 %v759_v51  ;;  %360 = vrot.lane.b32.xlu0 %v1747_v30, %s1527_s21  ;;  %v269_v30 = vcvt.s32.f32 %v267_v40  ;;  %v1536_v40 = vmov 0   ;;  %s1543_s21 = smov 126  }
 0x4dd   :  { %1340 = vmatmul.msk.bf16.vlgmr.msra.gmra.mxu1 %vm617_vm11, %v616_v56  ;;  %v1534_v56 = vmov 1  }
 0x4de   :  { %1410 = vset.pattern.permute.xlu0 %v1534_v56 }
 0x4f0   :  { %v589_v12 = vpop.xlane.xlu0 %588 }
 0x4f1   :  { %1470 = vrcp.f32 %v589_v12 }
 0x4f7   :  { %v1471_v52 = vpop.eup %1470 }
 0x4f8   :  { %v257_v58 = vpop.xlane.xlu0 %256  ;;  %v607_v60 = vmul.f32 %v1471_v52, %v1463_v39  ;;  %v1531_v39 = vmov 0.0  }
 0x4f9   :  { %vm258_vm15 = vcmp.eq.f32.partialorder %v255_v34, %v257_v58  ;;  %v263_v20 = vcvt.f32.s32 %v257_v58  ;;  %v1322_v27 = vsel %vm224_vm12, 1.0, %v1531_v39 }
 0x4fa   :  { %v259_v0 = vsel %vm258_vm15, %v254_v59, inf  ;;  %v615_v16 = vpack.c.bf16 %v607_v60, %v607_v60  ;;  %v1535_v59 = vmov 3  }
 0x4fb   :  { %260 = vmin.xlane.f32.xlu2 %v259_v0  ;;  %v264_v22 = vshll.u32 %v263_v20, 16 }
 0x52d   :  { %v272_v5 = vpop.xlane.xlu0 %271 }
 0x52e   :  { %vm273_vm6 = vcmp.eq.f32.partialorder %v270_v42, %v272_v5  ;;  %v278_v33 = vcvt.f32.s32 %v272_v5 }
 0x52f   :  { %v274_v32 = vsel %vm273_vm6, %v269_v30, inf }
 0x530   :  { %275 = vmin.xlane.f32.xlu2 %v274_v32  ;;  %v279_v34 = vshll.u32 %v278_v33, 16 }
 0x538   :  { %582 = vadd.xlane.f32.xlu2 %v581_v63 }
 0x540   :  { %v361_v9 = vpop.permute.xlu0 %360 }
 0x541   :  { %v372_v2 = vpack.c.bf16 %v361_v9, %v361_v9 }
 0x543   :  { %v740_v62 = vand.u32 %v1762_v45, %v372_v2  ;;  %v1321_v45 = vsel %vm223_vm10, 1.0, %v1531_v39  ;;  %vm966_vm10 = vcmask 244736  }
 0x545   :  { %749 = vmatpush.bf16.msra.mxu0 %v740_v62 }
 0x548   :  { %1339 = vmatmul.msk.bf16.vlgmr.msra.gmra.mxu0 %vm617_vm11, %v615_v16 }
 0x54a   :  { %v1863_v6 = vpop.f32.mrf.mxu1 }
 0x552   :  { %v696_v13 = vpop.f32.mrf.mxu1 }
 0x55a   :  { %v1865_v15 = vpop.f32.mrf.mxu1 }
 0x562   :  { %v772_v18 = vpop.f32.mrf.mxu1 }
 0x56e   :  { %v261_v21 = vpop.xlane.xlu2 %260 }
 0x56f   :  { %v262_v47 = vcvt.f32.s32 %v261_v21 }
 0x571   :  { %v265_v23 = vadd.s32 %v264_v22, %v262_v47 }
 0x573   :  { %vm281_vm7 = vcmp.eq.s32.totalorder %v1639_v28, %v265_v23 }
 0x574   :  { %v1323_v31 = vsel %vm281_vm7, 1.0, %v1531_v39 }
 0x575   :  { %v287_v25 = vadd.f32 %v1323_v31, %v1321_v45 }
 0x577   :  { %291 = vrot.lane.b32.xlu0 %v287_v25, %s1529_s23  ;;  %v1069_v29 = vsel %vm141_vm8, %v287_v25, 0.0 }
 0x5a3   :  { %v276_v11 = vpop.xlane.xlu2 %275 }
 0x5a4   :  { %v277_v36 = vcvt.f32.s32 %v276_v11 }
 0x5a6   :  { %v280_v8 = vadd.s32 %v279_v34, %v277_v36 }
 0x5a8   :  { %vm282_vm13 = vcmp.eq.s32.totalorder %v1639_v28, %v280_v8 }
 0x5a9   :  { %v1324_v26 = vsel %vm282_vm13, 1.0, %v1531_v39 }
 0x5aa   :  { %v288_v41 = vadd.f32 %v1324_v26, %v1322_v27 }
 0x5ab   :  { %v583_v42 = vpop.xlane.xlu2 %582 }
 0x5ac   :  { %1472 = vrcp.f32 %v583_v42  ;;  %293 = vrot.lane.b32.xlu2 %v288_v41, %s1529_s23  ;;  %v1070_v43 = vsel %vm145_vm9, %v288_v41, 0.0  ;;  %vm810_vm9 = vcmask 195584  }
 0x5ad   :  { %v1883_v44 = vadd.f32 %v1070_v43, %v1069_v29 }
 0x5b2   :  { %v1473_v46 = vpop.eup %1472 }
 0x5b3   :  { %v605_v48 = vmul.f32 %v1473_v46, %v1469_v61 }
 0x5b5   :  { %v613_v38 = vpack.c.bf16 %v605_v48, %v605_v48 }
 0x5b7   :  { %1337 = vmatmul.msk.bf16.vlgmr.msrb.gmra.mxu2 %vm617_vm11, %v613_v38 }
 0x5c5   :  { %v751_v28 = vpop.f32.mrf.mxu0 }
 0x5cd   :  { %v753_v10 = vpop.f32.mrf.mxu0 }
 0x5e9   :  { %v292_v49 = vpop.permute.xlu0 %291 }
 0x5ea   :  { %v297_v50 = vmul.f32 %v292_v49, %v1689_v24 }
 0x5ec   :  { %301 = vrot.lane.b32.xlu0 %v297_v50, %s1532_s1 }
 0x606   :  { %v294_v51 = vpop.permute.xlu2 %293 }
 0x607   :  { %v298_v53 = vmul.f32 %v294_v51, %v1695_v37 }
 0x609   :  { %303 = vrot.lane.b32.xlu1 %v298_v53, %s1532_s1 }
 0x63a   :  { %v1888_v54 = vpop.f32.mrf.mxu2 }
 0x642   :  { %v715_v12 = vpop.f32.mrf.mxu2 }
 0x643   :  { %v1911_v12 = vld [vmem:[%s2041_s4] sm:$0xff] }
 0x65e   :  { %v302_v57 = vpop.permute.xlu0 %301 }
 0x65f   :  { %v307_v58 = vsel %vm141_vm8, 1.0, %v302_v57  ;;  %v866_v57 = vperm.slane %v1911_v12, 2 }
 0x660   :  { %786 = vperm.xlu1 %1411, %v307_v58   ;;  %781 = vperm.xlu0 %1410, %v307_v58  }
 0x668   :  { %1414 = vset.pattern.permute.xlu0 %v1535_v59  ;;  %1412 = vset.pattern.permute.xlu1 %v1534_v56 }
 0x669   :  { %791 = vperm.xlu0 %1414, %v307_v58  }
 0x67b   :  { %v304_v0 = vpop.permute.xlu1 %303 }
 0x67c   :  { %v308_v1 = vsel %vm141_vm8, 1.0, %v304_v0  ;;  %vm808_vm8 = vcmask 130048   ;;  %v1495_v0 = vld [vmem:[#allocation2] sm:$0xff] }
 0x67d   :  { %830 = vperm.xlu2 %1413, %v308_v1   ;;  %822 = vperm.xlu1 %1412, %v308_v1  }
 0x685   :  { %1416 = vset.pattern.permute.xlu2 %v1536_v40  ;;  %1415 = vset.pattern.permute.xlu1 %v1535_v59 }
 0x686   :  { %776 = vperm.xlu2 %1416, %v307_v58   ;;  %838 = vperm.xlu1 %1415, %v308_v1  }
 0x68e   :  { %1417 = vset.pattern.permute.xlu1 %v1536_v40 }
 0x68f   :  { %814 = vperm.xlu1 %1417, %v308_v1  }
 0x697   :  { %869 = vrot.lane.b32.xlu1 %v1601_v3, %s1537_s28 }
 0x6d2   :  { %v787_v4 = vpop.permute.xlu1 %786  ;;  %v782_v2 = vpop.permute.xlu0 %781 }
 0x6d3   :  { %v832_v30 = vrot.slane %v787_v4, 7  ;;  %v789_v63 = vmul.f32 %v787_v4, %v1840_v19  ;;  %v824_v62 = vrot.slane %v782_v2, 7  ;;  %v784_v18 = vmul.f32 %v782_v2, %v1832_v14 }
 0x6d7   :  { %v831_v5 = vpop.permute.xlu2 %830 }
 0x6d8   :  { %v833_v32 = vrot.slane %v831_v5, 7 }
 0x6da   :  { %v834_v61 = vsel %vm320_vm5, %v832_v30, %v833_v32  ;;  %v1496_v30 = vld [vmem:[#allocation2 + $0x8] sm:$0x3f] }
 0x6db   :  { %v836_v52 = vmul.f32 %v834_v61, %v751_v28  ;;  %v792_v22 = vpop.permute.xlu0 %791 }
 0x6dc   :  { %v840_v47 = vrot.slane %v792_v22, 7  ;;  %v794_v31 = vmul.f32 %v792_v22, %v1863_v6 }
 0x6dd   :  { %v1423_v9 = vpack.i.bf16 %v789_v63, %v836_v52  ;;  %v1542_v63 = vmov 32.0  }
 0x6de   :  { %1474 = vrcp.f32 %v1542_v63 }
 0x6df   :  { %1424 = vrot.lane.b32.xlu0 %v1423_v9, %s1538_s29 }
 0x6e4   :  { %v1475_v52 = vpop.eup %1474 }
 0x6e5   :  { %v900_v9 = vmul.f32 32.0, %v1475_v52 }
 0x6e7   :  { %867 = vrot.lane.b32.xlu0 %v1614_v7, %s1537_s28  ;;  %v901_v2 = vsub.f32 1.0, %v900_v9  ;;  %v951_v9 = vperm.slane %v1911_v12, 5 }
 0x6ef   :  { %v823_v60 = vpop.permute.xlu1 %822 }
 0x6f0   :  { %v825_v16 = vrot.slane %v823_v60, 7  ;;  %v902_v60 = vmul.f32 %v1475_v52, %v901_v2 }
 0x6f2   :  { %v826_v13 = vsel %vm320_vm5, %v824_v62, %v825_v16  ;;  %v903_v62 = vadd.f32 %v1475_v52, %v902_v60 }
 0x6f3   :  { %v828_v20 = vmul.f32 %v826_v13, %v1838_v35  ;;  %v777_v35 = vpop.permute.xlu2 %776 }
 0x6f4   :  { %v816_v27 = vrot.slane %v777_v35, 7 }
 0x6f5   :  { %v1418_v21 = vpack.i.bf16 %v784_v18, %v828_v20 }
 0x6f7   :  { %1419 = vrot.lane.b32.xlu2 %v1418_v21, %s1539_s30 }
 0x6f8   :  { %v839_v19 = vpop.permute.xlu1 %838 }
 0x6f9   :  { %v841_v23 = vrot.slane %v839_v19, 7 }
 0x6fb   :  { %v842_v45 = vsel %vm320_vm5, %v840_v47, %v841_v23  ;;  %v1373_v47 = vld [vmem:[%s2040_s3 + $0x4] sm:$0xf]  ;;  %v1342_v23 = vld [vmem:[%s2040_s3 + $0x8] sm:$0xf0] }
 0x6fc   :  { %v844_v25 = vmul.f32 %v842_v45, %v1865_v15  ;;  %v779_v15 = vmul.f32 %v777_v35, %v1834_v17  ;;  %v1345_v45 = vor.u32 %v1373_v47, %v1342_v23 }
 0x6fe   :  { %v1428_v33 = vpack.i.bf16 %v794_v31, %v844_v25 }
 0x700   :  { %1429 = vrot.lane.b32.xlu2 %v1428_v33, %s1540_s9 }
 0x701   :  { %v815_v11 = vpop.permute.xlu1 %814 }
 0x702   :  { %v817_v34 = vrot.slane %v815_v11, 7  ;;  %v1375_v11 = vld [vmem:[%s2040_s3 + $0x14] sm:$0xf] }
 0x704   :  { %v818_v26 = vsel %vm320_vm5, %v816_v27, %v817_v34  ;;  %vm863_vm5 = vcmask 1046528  }
 0x705   :  { %v820_v42 = vmul.f32 %v818_v26, %v1888_v54 }
 0x709   :  { %v870_v14 = vpop.permute.xlu1 %869 }
 0x70a   :  { %882 = vmatpush.bf16.msra.mxu2 %v870_v14  ;;  %v1346_v14 = vld [vmem:[%s2040_s3 + $0x18] sm:$0xf0] }
 0x70b   :  { %v1349_v35 = vor.u32 %v1375_v11, %v1346_v14 }
 0x751   :  { %v1420_v36 = vpop.permute.xlu2 %1419  ;;  %v1425_v8 = vpop.permute.xlu0 %1424 }
 0x752   :  { %v1421_v41 = vunpack.i.l.bf16 %v1420_v36  ;;  %v1422_v29 = vunpack.i.h.bf16 %v1420_v36  ;;  %v1426_v6 = vunpack.i.l.bf16 %v1425_v8  ;;  %v1427_v48 = vunpack.i.h.bf16 %v1425_v8 }
 0x754   :  { %v857_v43 = vsel %vm374_vm3, %v820_v42, %v1421_v41  ;;  %v807_v28 = vsel %vm374_vm3, %v779_v15, %v1422_v29  ;;  %vm904_vm3 = vweird.f32 %v1475_v52 }
 0x755   :  { %v858_v50 = vsel %vm808_vm8, %v857_v43, %v1426_v6  ;;  %v809_v53 = vsel %vm808_vm8, %v807_v28, %v1427_v48  ;;  %v1918_v16 = vsel %vm904_vm3, %v1475_v52, %v903_v62 }
 0x759   :  { %v868_v46 = vpop.permute.xlu0 %867 }
 0x75a   :  { %v1430_v38 = vpop.permute.xlu2 %1429  ;;  %883 = vmatpush.bf16.msra.mxu2 %v868_v46 }
 0x75b   :  { %v1432_v10 = vunpack.i.h.bf16 %v1430_v38  ;;  %v1431_v49 = vunpack.i.l.bf16 %v1430_v38 }
 0x75d   :  { %v859_v51 = vsel %vm810_vm9, %v858_v50, %v1431_v49  ;;  %v811_v55 = vsel %vm810_vm9, %v809_v53, %v1432_v10 }
 0x75e   :  { %v861_v54 = vrot.slane %v859_v51, 1 }
 0x760   :  { %v864_v56 = vsel %vm863_vm5, %v811_v55, %v861_v54 }
 0x761   :  { %v865_v17 = vpack.c.bf16 %v861_v54, %v864_v56  ;;  %v944_v54 = vperm.slane %v1911_v12, 3 }
 0x763   :  { %1341 = vmatmul.msk.bf16.vlgmr.msra.gmra.mxu2 %vm36_vm0, %v865_v17 }
 0x7e6   :  { %v885_v58 = vpop.f32.mrf.mxu2 }
 0x7e7   :  { %v886_v59 = vadd.f32 %v885_v58, %v866_v57  ;;  %v947_v58 = vperm.slane %v1911_v12, 4 }
 0x7e9   :  { %v890_v1 = vadd.f32 %v1495_v0, %v886_v59 }
 0x7eb   :  { %v892_v40 = vsel %vm36_vm0, %v890_v1, 0.0 }
 0x7ec   :  { %893 = vadd.xlane.f32.xlu1 %v892_v40 }
 0x7ee   :  { %v887_v4 = vpop.f32.mrf.mxu2 }
 0x7ef   :  { %v888_v5 = vadd.f32 %v887_v4, %v866_v57 }
 0x7f1   :  { %v891_v32 = vadd.f32 %v1496_v30, %v888_v5 }
 0x7f3   :  { %v896_v61 = vsel %vm38_vm1, %v891_v32, 0.0 }
 0x7f4   :  { %897 = vadd.xlane.f32.xlu2 %v896_v61 }
 0x80c   :  { %962 = vrot.lane.b32.xlu2 %v1601_v3, %s1541_s12 }
 0x814   :  { %960 = vrot.lane.b32.xlu2 %v1345_v45, %s1541_s12 }
 0x85f   :  { %v894_v13 = vpop.xlane.xlu1 %893 }
 0x860   :  { %v906_v18 = vmul.f32 %v1918_v16, %v894_v13 }
 0x862   :  { %v908_v20 = vsub.f32 %v890_v1, %v906_v18 }
 0x864   :  { %v910_v21 = vmul.f32 %v908_v20, %v908_v20 }
 0x866   :  { %v912_v22 = vsel %vm36_vm0, %v910_v21, 0.0  ;;  %v991_v21 = vperm.slane %v1911_v12, 6 }
 0x867   :  { %v898_v19 = vpop.xlane.xlu2 %897  ;;  %913 = vadd.xlane.f32.xlu0 %v912_v22 }
 0x868   :  { %v907_v3 = vmul.f32 %v1918_v16, %v898_v19 }
 0x86a   :  { %v909_v31 = vsub.f32 %v891_v32, %v907_v3 }
 0x86c   :  { %v911_v25 = vmul.f32 %v909_v31, %v909_v31 }
 0x86e   :  { %v915_v33 = vsel %vm38_vm1, %v911_v25, 0.0 }
 0x86f   :  { %916 = vadd.xlane.f32.xlu1 %v915_v33  ;;  %v963_v43 = vpop.permute.xlu2 %962 }
 0x877   :  { %v961_v57 = vpop.permute.xlu2 %960 }
 0x87b   :  { %964 = vrot.lane.b32.xlu0 %v1349_v35, %s1541_s12 }
 0x883   :  { %994 = vrot.lane.b32.xlu0 %v1349_v35, %s1543_s21 }
 0x888   :  { %958 = vrot.lane.b32.xlu1 %v1614_v7, %s1541_s12 }
 0x890   :  { %992 = vrot.lane.b32.xlu1 %v1345_v45, %s1543_s21 }
 0x8da   :  { %v914_v34 = vpop.xlane.xlu0 %913 }
 0x8db   :  { %v918_v36 = vmul.f32 %v914_v34, %v1918_v16 }
 0x8dd   :  { %v920_v8 = vadd.f32 1e-05, %v918_v36 }
 0x8df   :  { %1476 = vrsqrt.f32 %v920_v8  ;;  %vm928_vm12 = vweird.f32 %v920_v8 }
 0x8e2   :  { %v917_v27 = vpop.xlane.xlu1 %916 }
 0x8e3   :  { %v919_v26 = vmul.f32 %v917_v27, %v1918_v16 }
 0x8e5   :  { %v1477_v41 = vpop.eup %1476  ;;  %v921_v42 = vadd.f32 1e-05, %v919_v26 }
 0x8e6   :  { %v923_v29 = vmul.f32 %v1477_v41, %v920_v8  ;;  %vm929_vm11 = vweird.f32 %v1477_v41 }
 0x8e7   :  { %1478 = vrsqrt.f32 %v921_v42  ;;  %vm930_vm14 = vmor %vm928_vm12, %vm929_vm11  ;;  %vm938_vm6 = vweird.f32 %v921_v42  ;;  %vm1102_vm11 = vcmask 8192   ;;  %vm1206_vm12 = vcmask 523264  }
 0x8e8   :  { %v924_v6 = vmul.f32 %v1477_v41, %v923_v29  ;;  %v1086_v29 = vsel %vm119_vm2, %v1689_v24, 0.0  ;;  %v1121_v24 = vld [vmem:[%s2043_s6] sm:$0x3] }
 0x8ea   :  { %v925_v15 = vmul.f32 0.5, %v924_v6  ;;  %v1544_v6 = vmov 14.0  }
 0x8eb   :  { %1480 = vrcp.f32 %v1544_v6 }
 0x8ec   :  { %v926_v46 = vsub.f32 1.5, %v925_v15 }
 0x8ed   :  { %v1479_v48 = vpop.eup %1478  ;;  %v965_v7 = vpop.permute.xlu0 %964 }
 0x8ee   :  { %v927_v38 = vmul.f32 %v1477_v41, %v926_v46  ;;  %v933_v28 = vmul.f32 %v1479_v48, %v921_v42  ;;  %v968_v10 = vsel %vm966_vm10, %v963_v43, %v965_v7  ;;  %vm939_vm15 = vweird.f32 %v1479_v48 }
 0x8ef   :  { %980 = vmatpush.bf16.msra.mxu3 %v968_v10  ;;  %vm940_vm7 = vmor %vm938_vm6, %vm939_vm15  ;;  %v1087_v42 = vsel %vm123_vm4, %v1695_v37, 0.0  ;;  %vm40_vm4 = vcmask 0  }
 0x8f0   :  { %v934_v49 = vmul.f32 %v1479_v48, %v933_v28  ;;  %v931_v50 = vsel %vm930_vm14, %v1477_v41, %v927_v38  ;;  %v1088_v15 = vadd.f32 %v1087_v42, %v1086_v29  ;;  %v1379_v38 = vld [vmem:[%s2042_s5 + $0x10] sm:$0xff]  ;;  %41 = vst.msk [vmem:[#allocation4] sm:$0x1] %vm40_vm4, %v1531_v39 }
 0x8f1   :  { %v942_v55 = vmul.f32 %v931_v50, %v908_v20  ;;  %v1481_v46 = vpop.eup %1480  ;;  %v1226_v50 = vperm.slane %v1121_v24, 1 }
 0x8f2   :  { %v935_v51 = vmul.f32 0.5, %v934_v49  ;;  %v1089_v43 = vrot.slane %v1088_v15, 4  ;;  %v1079_v7 = vmul.f32 14.0, %v1481_v46  ;;  %vm1083_vm2 = vweird.f32 %v1481_v46 }
 0x8f3   :  { %v945_v59 = vmul.f32 %v944_v54, %v942_v55 }
 0x8f4   :  { %v936_v53 = vsub.f32 1.5, %v935_v51  ;;  %v1080_v10 = vsub.f32 1.0, %v1079_v7 }
 0x8f5   :  { %v948_v5 = vadd.f32 %v947_v58, %v945_v59  ;;  %v995_v61 = vpop.permute.xlu0 %994 }
 0x8f6   :  { %v937_v56 = vmul.f32 %v1479_v48, %v936_v53  ;;  %1007 = vmatpush.bf16.msrb.mxu0 %v995_v61  ;;  %v1081_v49 = vmul.f32 %v1481_v46, %v1080_v10 }
 0x8f8   :  { %v941_v17 = vsel %vm940_vm7, %v1479_v48, %v937_v56  ;;  %v1090_v48 = vadd.f32 %v1089_v43, %v1088_v15  ;;  %v1082_v53 = vadd.f32 %v1481_v46, %v1081_v49 }
 0x8f9   :  { %v943_v0 = vmul.f32 %v941_v17, %v909_v31  ;;  %v1380_v17 = vld [vmem:[%s2042_s5 + $0x18] sm:$0xff] }
 0x8fa   :  { %v959_v1 = vpop.permute.xlu1 %958  ;;  %v1091_v28 = vrot.slane %v1090_v48, 2  ;;  %v1976_v55 = vsel %vm1083_vm2, %v1481_v46, %v1082_v53  ;;  %1147 = vmatpush.bf16.msrb.mxu1 %v1380_v17 }
 0x8fb   :  { %v946_v40 = vmul.f32 %v944_v54, %v943_v0  ;;  %v967_v4 = vsel %vm966_vm10, %v959_v1, %v961_v57  ;;  %v1378_v57 = vld [vmem:[%s2042_s5 + $0x8] sm:$0xff]  ;;  %v1377_v1 = vld [vmem:[%s2042_s5] sm:$0xff] }
 0x8fc   :  { %981 = vmatpush.bf16.msra.mxu3 %v967_v4  ;;  %v1092_v37 = vadd.f32 %v1091_v28, %v1090_v48  ;;  %1176 = vmatpush.bf16.msrb.mxu2 %v1378_v57  ;;  %v1124_v4 = vld [vmem:[%s2039_s2 + $0x8] sm:$0x3f] }
 0x8fd   :  { %v949_v30 = vadd.f32 %v947_v58, %v946_v40  ;;  %v1123_v40 = vld [vmem:[%s2039_s2] sm:$0xff] }
 0x8fe   :  { %v1093_v51 = vrot.slane %v1092_v37, 1  ;;  %1148 = vmatpush.bf16.msrb.mxu1 %v1379_v38 }
 0x8ff   :  { %v950_v32 = vpack.c.bf16 %v949_v30, %v948_v5 }
 0x900   :  { %v1094_v54 = vadd.f32 %v1093_v51, %v1092_v37  ;;  %1177 = vmatpush.bf16.msrb.mxu2 %v1377_v1 }
 0x901   :  { %1350 = vmatmul.msk.bf16.vlgmr.msra.gmra.mxu3 %vm36_vm0, %v950_v32 }
 0x902   :  { %v993_v63 = vpop.permute.xlu1 %992  ;;  %v1095_v56 = vmul.f32 %v1094_v54, %v1976_v55 }
 0x903   :  { %1008 = vmatpush.bf16.msrb.mxu0 %v993_v63 }
 0x984   :  { %v983_v52 = vpop.f32.mrf.mxu3 }
 0x985   :  { %v984_v2 = vadd.f32 %v983_v52, %v951_v9 }
 0x987   :  { %v988_v13 = vmax.f32 %v984_v2, 0.0 }
 0x98c   :  { %v985_v60 = vpop.f32.mrf.mxu3 }
 0x98d   :  { %v986_v62 = vadd.f32 %v985_v60, %v951_v9  ;;  %v2005_v60 = vperm.slane %v1121_v24, 0 }
 0x98f   :  { %v989_v18 = vmax.f32 %v986_v62, 0.0 }
 0x991   :  { %v990_v20 = vpack.c.bf16 %v989_v18, %v988_v13 }
 0x993   :  { %1351 = vmatmul.msk.bf16.vlgmr.msrb.gmra.mxu0 %vm36_vm0, %v990_v20 }
 0xa10   :  { %v1010_v22 = vpop.f32.mrf.mxu0 }
 0xa11   :  { %v1011_v19 = vadd.f32 %v1010_v22, %v991_v21 }
 0xa13   :  { %v1015_v3 = vadd.f32 %v1011_v19, %v948_v5  ;;  %v1125_v5 = vpack.c.bf16 %v1124_v4, %v1123_v40 }
 0xa15   :  { %v1017_v47 = vsel %vm36_vm0, %v1015_v3, 0.0  ;;  %1360 = vmatmul.msk.bf16.vlgmr.msrb.gmra.mxu1 %vm36_vm0, %v1125_v5 }
 0xa16   :  { %1018 = vadd.xlane.f32.xlu2 %v1017_v47 }
 0xa18   :  { %v1012_v23 = vpop.f32.mrf.mxu0 }
 0xa19   :  { %v1013_v45 = vadd.f32 %v1012_v23, %v991_v21  ;;  %v1433_v23 = vld [vmem:[%s2041_s4 + $0x8] ss:$0 sm:$0xff]  ;;  %s1546_s4 = smov [#allocation4]  }
 0xa1a   :  { %s1298_s12 = sshll.u32 %s1546_s4, 4  ;;  %s1299_s12 = int_to_ptr.vmem [resolvable:$true] %s1298_s12 }
 0xa1b   :  { %v1016_v31 = vadd.f32 %v1013_v45, %v949_v30  ;;  %v1072_v30 = vrot.slane %v1883_v44, 4 }
 0xa1d   :  { %v1020_v25 = vsel %vm38_vm1, %v1016_v31, 0.0  ;;  %v1073_v9 = vadd.f32 %v1072_v30, %v1883_v44  ;;  %v1061_v44 = vperm.slane %v1911_v12, 7 }
 0xa1e   :  { %1021 = vadd.xlane.f32.xlu0 %v1020_v25 }
 0xa1f   :  { %v1074_v13 = vrot.slane %v1073_v9, 2 }
 0xa21   :  { %v1075_v22 = vadd.f32 %v1074_v13, %v1073_v9 }
 0xa32   :  { %1196 = vrot.lane.b32.xlu0 %v1380_v17, %s1545_s24 }
 0xa3a   :  { %1190 = vrot.lane.b32.xlu0 %v1377_v1, %s1545_s24 }
 0xa42   :  { %1203 = vrot.lane.b32.xlu0 %v2005_v60, %s1545_s24 }
 0xa89   :  { %v1019_v33 = vpop.xlane.xlu2 %1018 }
 0xa8a   :  { %v1023_v11 = vmul.f32 %v1019_v33, %v1918_v16 }
 0xa8c   :  { %v1953_v14 = vsub.f32 %v1015_v3, %v1023_v11 }
 0xa8e   :  { %v1027_v35 = vmul.f32 %v1953_v14, %v1953_v14 }
 0xa90   :  { %v1029_v34 = vsel %vm36_vm0, %v1027_v35, 0.0 }
 0xa91   :  { %v1022_v36 = vpop.xlane.xlu0 %1021  ;;  %1030 = vadd.xlane.f32.xlu1 %v1029_v34 }
 0xa92   :  { %v1024_v8 = vmul.f32 %v1022_v36, %v1918_v16  ;;  %v1150_v24 = vpop.f32.mrf.mxu1 }
 0xa94   :  { %v1959_v27 = vsub.f32 %v1016_v31, %v1024_v8  ;;  %v1076_v31 = vrot.slane %v1075_v22, 1 }
 0xa96   :  { %v1028_v26 = vmul.f32 %v1959_v27, %v1959_v27  ;;  %v1077_v36 = vadd.f32 %v1076_v31, %v1075_v22 }
 0xa98   :  { %v1032_v41 = vsel %vm38_vm1, %v1028_v26, 0.0 }
 0xa99   :  { %1033 = vadd.xlane.f32.xlu2 %v1032_v41  ;;  %v1085_v41 = vmul.f32 %v1976_v55, %v1077_v36 }
 0xaa4   :  { %v1197_v46 = vpop.permute.xlu0 %1196 }
 0xaa5   :  { %1214 = vmatpush.bf16.msrb.mxu3 %v1197_v46 }
 0xaaa   :  { %1192 = vrot.lane.b32.xlu1 %v1378_v57, %s1545_s24 }
 0xaac   :  { %v1191_v28 = vpop.permute.xlu0 %1190 }
 0xab1   :  { %1194 = vrot.lane.b32.xlu2 %v1379_v38, %s1545_s24 }
 0xab9   :  { %1228 = vrot.lane.b32.xlu2 %v1226_v50, %s1545_s24  ;;  %v1152_v50 = vpop.f32.mrf.mxu1 }
 0xac1   :  { %1098 = vrot.lane.b32.xlu2 %v1095_v56, %s1525_s19 }
 0xb04   :  { %v1031_v58 = vpop.xlane.xlu1 %1030 }
 0xb05   :  { %v1035_v59 = vmul.f32 %v1031_v58, %v1918_v16  ;;  %v1204_v58 = vpop.permute.xlu0 %1203 }
 0xb07   :  { %v1037_v0 = vadd.f32 1e-05, %v1035_v59 }
 0xb09   :  { %1482 = vrsqrt.f32 %v1037_v0  ;;  %vm1045_vm8 = vweird.f32 %v1037_v0 }
 0xb0c   :  { %v1034_v32 = vpop.xlane.xlu2 %1033 }
 0xb0d   :  { %v1036_v61 = vmul.f32 %v1034_v32, %v1918_v16 }
 0xb0f   :  { %v1483_v63 = vpop.eup %1482  ;;  %v1038_v52 = vadd.f32 1e-05, %v1036_v61 }
 0xb10   :  { %v1040_v2 = vmul.f32 %v1483_v63, %v1037_v0  ;;  %vm1046_vm13 = vweird.f32 %v1483_v63 }
 0xb11   :  { %1484 = vrsqrt.f32 %v1038_v52  ;;  %vm1047_vm9 = vmor %vm1045_vm8, %vm1046_vm13  ;;  %vm1055_vm3 = vweird.f32 %v1038_v52  ;;  %vm1287_vm13 = vcmask 7168   ;;  %vm1289_vm8 = vcmask 5120  }
 0xb12   :  { %v1041_v62 = vmul.f32 %v1483_v63, %v1040_v2 }
 0xb14   :  { %v1042_v18 = vmul.f32 0.5, %v1041_v62  ;;  %v1195_v20 = vpop.permute.xlu2 %1194 }
 0xb15   :  { %1215 = vmatpush.bf16.msrb.mxu3 %v1195_v20 }
 0xb16   :  { %v1043_v21 = vsub.f32 1.5, %v1042_v18 }
 0xb17   :  { %v1485_v39 = vpop.eup %1484 }
 0xb18   :  { %v1044_v16 = vmul.f32 %v1483_v63, %v1043_v21  ;;  %v1050_v19 = vmul.f32 %v1485_v39, %v1038_v52  ;;  %vm1056_vm5 = vweird.f32 %v1485_v39 }
 0xb19   :  { %vm1057_vm10 = vmor %vm1055_vm3, %vm1056_vm5 }
 0xb1a   :  { %v1048_v3 = vsel %vm1047_vm9, %v1483_v63, %v1044_v16  ;;  %v1051_v47 = vmul.f32 %v1485_v39, %v1050_v19 }
 0xb1b   :  { %v1059_v45 = vmul.f32 %v1048_v3, %v1953_v14 }
 0xb1c   :  { %v1052_v25 = vmul.f32 0.5, %v1051_v47  ;;  %v1229_v33 = vpop.permute.xlu2 %1228  ;;  %v1193_v48 = vpop.permute.xlu1 %1192 }
 0xb1d   :  { %v1062_v11 = vmul.f32 %v1061_v44, %v1059_v45  ;;  %1216 = vmatpush.bf16.msrb.mxu3 %v1193_v48 }
 0xb1e   :  { %v1053_v35 = vsub.f32 1.5, %v1052_v25 }
 0xb1f   :  { %v1065_v34 = vadd.f32 %v1433_v23, %v1062_v11 }
 0xb20   :  { %v1054_v8 = vmul.f32 %v1485_v39, %v1053_v35 }
 0xb21   :  { %1067 = vst.msk [vmem:[#allocation2] sm:$0xff] %vm36_vm0, %v1065_v34  ;;  %1217 = vmatpush.bf16.msrb.mxu3 %v1191_v28 }
 0xb22   :  { %v1058_v12 = vsel %vm1057_vm10, %v1485_v39, %v1054_v8 }
 0xb23   :  { %v1060_v26 = vmul.f32 %v1058_v12, %v1959_v27  ;;  %v1096_v27 = vld [vmem:[#allocation4] sm:$0x1] }
 0xb24   :  { %v1099_v42 = vpop.permute.xlu2 %1098 }
 0xb25   :  { %v1063_v14 = vmul.f32 %v1061_v44, %v1060_v26  ;;  %v1101_v29 = vmul.f32 %v1099_v42, %v1085_v41 }
 0xb27   :  { %v1066_v6 = vadd.f32 %v1433_v23, %v1063_v14  ;;  %v1103_v15 = vsel %vm1102_vm11, %v1101_v29, 0.0 }
 0xb28   :  { %1104 = vadd.xlane.f32.xlu2 %v1103_v15 }
 0xb29   :  { %1068 = vst.msk [vmem:[#allocation2 + $0x8] sm:$0x3f] %vm38_vm1, %v1066_v6  ;;  %v1122_v43 = vpack.c.bf16 %v1066_v6, %v1065_v34 }
 0xb2b   :  { %1369 = vmatmul.msk.bf16.vlgmr.msrb.gmra.mxu2 %vm36_vm0, %v1122_v43 }
 0xb9b   :  { %v1105_v7 = vpop.xlane.xlu2 %1104 }
 0xb9c   :  { %v1106_v38 = vmul.f32 2.0, %v1105_v7 }
 0xb9e   :  { %v1107_v10 = vadd.f32 %v1106_v38, %v1096_v27 }
 0xba0   :  { %1109 = vst.msk [vmem:[#allocation4] sm:$0x1] %vm40_vm4, %v1107_v10 }
 0xba1   :  { %1303 = dma.vmem_to_hbm [thread:$0]  %s1299_s12, 16, %s1301_s15, [#allocation5]  }
 0xbae   :  { %v1179_v37 = vpop.f32.mrf.mxu2 }
 0xbaf   :  { %v1180_v49 = vadd.f32 %v1179_v37, %v1150_v24 }
 0xbb1   :  { %v1185_v53 = vadd.f32 %v2005_v60, %v1180_v49 }
 0xbb3   :  { %v1187_v56 = vmax.f32 %v1185_v53, 0.0 }
 0xbb6   :  { %v1181_v51 = vpop.f32.mrf.mxu2 }
 0xbb7   :  { %v1182_v54 = vadd.f32 %v1181_v51, %v1152_v50 }
 0xbb9   :  { %v1186_v55 = vadd.f32 %v2005_v60, %v1182_v54 }
 0xbbb   :  { %v1188_v17 = vmax.f32 %v1186_v55, 0.0 }
 0xbbd   :  { %v1189_v57 = vpack.c.bf16 %v1188_v17, %v1187_v56 }
 0xbbf   :  { %1370 = vmatmul.msk.bf16.vlgmr.msrb.gmra.mxu3 %vm1206_vm12, %v1189_v57 }
 0xc42   :  { %v1219_v59 = vpop.f32.mrf.mxu3 }
 0xc43   :  { %v1220_v0 = vadd.f32 %v1219_v59, %v1204_v58 }
 0xc45   :  { %v1224_v1 = vmax.f32 %v1220_v0, 0.0 }
 0xc47   :  { %v1231_v40 = vmul.f32 %v1229_v33, %v1224_v1 }
 0xc49   :  { %v1233_v4 = vsel %vm36_vm0, %v1231_v40, 0.0 }
 0xc4a   :  { %v1221_v5 = vpop.f32.mrf.mxu3  ;;  %1234 = vadd.xlane.f32.xlu1 %v1233_v4 }
 0xc4b   :  { %v1222_v30 = vadd.f32 %v1221_v5, %v1204_v58 }
 0xc4d   :  { %v1225_v32 = vmax.f32 %v1222_v30, 0.0 }
 0xc4f   :  { %v1232_v61 = vmul.f32 %v1229_v33, %v1225_v32 }
 0xc51   :  { %v1236_v63 = vsel %vm38_vm1, %v1232_v61, 0.0 }
 0xc52   :  { %1237 = vadd.xlane.f32.xlu0 %v1236_v63 }
 0xcbd   :  { %v1235_v52 = vpop.xlane.xlu1 %1234 }
 0xcbe   :  { %v1239_v9 = vadd.f32 %v1235_v52, %v2005_v60 }
 0xcc0   :  { %v1371_v2 = vmul.f32 -1.442695, %v1239_v9 }
 0xcc2   :  { %1486 = vpow2.f32 %v1371_v2 }
 0xcc5   :  { %v1238_v62 = vpop.xlane.xlu0 %1237 }
 0xcc6   :  { %v1240_v13 = vadd.f32 %v1238_v62, %v2005_v60 }
 0xcc8   :  { %v1487_v18 = vpop.eup %1486  ;;  %v1372_v20 = vmul.f32 -1.442695, %v1240_v13 }
 0xcc9   :  { %v1247_v21 = vadd.f32 1.0, %v1487_v18 }
 0xcca   :  { %1488 = vpow2.f32 %v1372_v20 }
 0xccb   :  { %1490 = vrcp.f32 %v1247_v21  ;;  %v1260_v3 = vand.u32 2147483648, %v1247_v21  ;;  %v1258_v23 = vand.u32 2147483647, %v1247_v21  ;;  %vm1254_vm1 = vweird.f32 %v1247_v21 }
 0xccd   :  { %v1261_v31 = vor.u32 1.1754944e-38, %v1260_v3  ;;  %vm1259_vm15 = vcmp.eq.f32.partialorder %v1258_v23, 8.507059e+37 }
 0xcd0   :  { %v1489_v39 = vpop.eup %1488 }
 0xcd1   :  { %v1491_v22 = vpop.eup %1490  ;;  %v1248_v16 = vadd.f32 1.0, %v1489_v39 }
 0xcd2   :  { %v1250_v19 = vmul.f32 %v1491_v22, %v1247_v21  ;;  %vm1255_vm0 = vweird.f32 %v1491_v22 }
 0xcd3   :  { %1492 = vrcp.f32 %v1248_v16  ;;  %vm1256_vm14 = vmor %vm1254_vm1, %vm1255_vm0  ;;  %v1275_v34 = vand.u32 2147483648, %v1248_v16  ;;  %v1273_v8 = vand.u32 2147483647, %v1248_v16  ;;  %vm1269_vm7 = vweird.f32 %v1248_v16 }
 0xcd4   :  { %v1251_v44 = vsub.f32 1.0, %v1250_v19 }
 0xcd5   :  { %v1276_v26 = vor.u32 1.1754944e-38, %v1275_v34  ;;  %vm1274_vm4 = vcmp.eq.f32.partialorder %v1273_v8, 8.507059e+37 }
 0xcd6   :  { %v1252_v47 = vmul.f32 %v1491_v22, %v1251_v44 }
 0xcd8   :  { %v1253_v60 = vadd.f32 %v1491_v22, %v1252_v47 }
 0xcd9   :  { %v1493_v45 = vpop.eup %1492 }
 0xcda   :  { %v1257_v25 = vsel %vm1256_vm14, %v1491_v22, %v1253_v60  ;;  %v1265_v33 = vmul.f32 %v1493_v45, %v1248_v16  ;;  %vm1270_vm6 = vweird.f32 %v1493_v45 }
 0xcdb   :  { %v1262_v11 = vsel %vm1259_vm15, %v1261_v31, %v1257_v25  ;;  %vm1271_vm2 = vmor %vm1269_vm7, %vm1270_vm6 }
 0xcdc   :  { %1281 = vrot.lane.b32.xlu1 %v1262_v11, %s1529_s23  ;;  %v1266_v35 = vsub.f32 1.0, %v1265_v33 }
 0xcde   :  { %v1267_v36 = vmul.f32 %v1493_v45, %v1266_v35 }
 0xce0   :  { %v1268_v12 = vadd.f32 %v1493_v45, %v1267_v36 }
 0xce2   :  { %v1272_v41 = vsel %vm1271_vm2, %v1493_v45, %v1268_v12 }
 0xce3   :  { %v1277_v42 = vsel %vm1274_vm4, %v1276_v26, %v1272_v41 }
 0xce4   :  { %1283 = vrot.lane.b32.xlu0 %v1277_v42, %s1529_s23 }
 0xd4e   :  { %v1282_v14 = vpop.permute.xlu1 %1281 }
 0xd4f   :  { %1288 = vst.msk [vmem:[%s2044_s7] sm:$0xff] %vm1287_vm13, %v1282_v14 }
 0xd56   :  { %v1284_v29 = vpop.permute.xlu0 %1283 }
 0xd57   :  { %1290 = vst.msk [vmem:[%s2044_s7 + $0x8] sm:$0x3f] %vm1289_vm8, %v1284_v29 }
 0xd58   :  { %1521 = dma.done.wait [#allocation5], 16  }
 0xd59   :  { %1522 = vsyncadd [#allocation5], 4294967280 }
 0xd5a   :  { %1310 = vsyncpa [#allocation5], 1 }

</bundles_post_ra>
